<compile_context>
chip_gen: v6e
topology: v6e:2x2x1
jax: 0.10.0
libtpu: 0.0.40
codegen_flags: <defaults>
</compile_context>

<pallas_src>
import functools

import jax
import jax.numpy as jnp
from jax.experimental import pallas as pl
from jax.experimental.pallas import tpu as pltpu


def _sepconv_kernel(x_ref, dw_ref, pw_ref, bias_ref, o_ref, *, k, dilation):
    # x_ref:    (B_tile, H+2p, W+2p, C_in)   zero-padded input, NHWC
    # dw_ref:   (k*k, C_in)                  depthwise weights (BN scale folded)
    # pw_ref:   (C_in, C_out)                pointwise 1x1 conv weights
    # bias_ref: (1, C_out)                   BN bias folded through pointwise
    # o_ref:    (B_tile, H_out, W_out, C_out)
    b_tile, h_out, w_out, c_out = o_ref.shape
    c_in = x_ref.shape[-1]

    dw = dw_ref[...].astype(jnp.float32)  # (k*k, c_in)

    # Depthwise conv: nine shifted windows, accumulate in f32 on the VPU.
    acc = jnp.zeros((b_tile, h_out, w_out, c_in), dtype=jnp.float32)
    for kh in range(k):
        for kw in range(k):
            h0 = kh * dilation
            w0 = kw * dilation
            win = x_ref[:, h0:h0 + h_out, w0:w0 + w_out, :].astype(jnp.float32)
            w_k = dw[kh * k + kw].reshape(1, 1, 1, c_in)
            acc = acc + win * w_k

    # Pointwise 1x1 conv == batched matmul on the MXU, C_in on the lane axis.
    y = jnp.dot(acc.reshape(b_tile * h_out * w_out, c_in),
                pw_ref[...].astype(jnp.float32),
                preferred_element_type=jnp.float32)
    # Folded eval-mode BN bias, already pushed through the pointwise weights.
    y = y + bias_ref[...].astype(jnp.float32)
    o_ref[...] = y.reshape(b_tile, h_out, w_out, c_out).astype(o_ref.dtype)


def separable_conv2d(x, dw_weight, pw_weight, gamma, beta, running_mean,
                     running_var, *, padding=1, dilation=1, eps=1e-5,
                     b_tile=None):
    """x: (N, C_in, H, W) NCHW; dw_weight: (C_in, 1, K, K);
    pw_weight: (C_out, C_in, 1, 1); BN params: (C_in,). Returns NCHW output."""
    N, C_in, H, W = x.shape
    C_out = pw_weight.shape[0]
    K = dw_weight.shape[-1]
    H_out = H + 2 * padding - dilation * (K - 1)
    W_out = W + 2 * padding - dilation * (K - 1)
    assert H_out > 0 and W_out > 0

    # Fold eval-mode BN into depthwise weights (scale) + per-channel bias,
    # and fold the bias linearly through the pointwise conv:
    #   (acc + bias_bn) @ pw == acc @ pw + (bias_bn @ pw)
    scale = (gamma / jnp.sqrt(running_var + eps)).astype(jnp.float32)           # (C_in,)
    bias_bn = (beta - running_mean * scale).reshape(1, C_in).astype(jnp.float32)
    dw = (dw_weight.reshape(C_in, K * K).astype(jnp.float32)
          * scale[:, None]).T                                                   # (K*K, C_in)
    pw = pw_weight.reshape(C_out, C_in).T.astype(jnp.float32)                   # (C_in, C_out)
    bias_pw = jnp.dot(bias_bn, pw,
                      preferred_element_type=jnp.float32)                       # (1, C_out)

    # NCHW -> NHWC (channels lane-dense); zero-pad spatial dims in the wrapper.
    x_nhwc = jnp.transpose(x, (0, 2, 3, 1))
    x_pad = jnp.pad(x_nhwc,
                    ((0, 0), (padding, padding), (padding, padding), (0, 0)))
    Hp, Wp = H + 2 * padding, W + 2 * padding

    # Pick a batch tile: double-buffered input + output blocks plus the f32
    # accumulator and slice temporaries must stay within a conservative
    # ~20 MiB budget (safe under the scoped VMEM default on all chips) while
    # amortizing the per-grid-step pipeline overhead.
    itemsize = x.dtype.itemsize
    in_b = Hp * Wp * C_in * itemsize
    out_b = H_out * W_out * C_out * itemsize
    acc_b = H_out * W_out * C_in * 4
    per_batch_bytes = 2 * in_b + 2 * out_b + acc_b + in_b  # +in_b: slice temps
    if b_tile is None:
        budget = 20 * 1024 * 1024
        b_tile = max(1, min(N, budget // max(per_batch_bytes, 1)))
        while N % b_tile:
            b_tile -= 1
    assert N % b_tile == 0

    kernel = functools.partial(_sepconv_kernel, k=K, dilation=dilation)

    out_nhwc = pl.pallas_call(
        kernel,
        out_shape=jax.ShapeDtypeStruct((N, H_out, W_out, C_out), x.dtype),
        grid_spec=pltpu.PrefetchScalarGridSpec(
            num_scalar_prefetch=0,
            grid=(N // b_tile,),
            in_specs=[
                pl.BlockSpec((b_tile, Hp, Wp, C_in), lambda b: (b, 0, 0, 0)),
                pl.BlockSpec((K * K, C_in), lambda b: (0, 0)),
                pl.BlockSpec((C_in, C_out), lambda b: (0, 0)),
                pl.BlockSpec((1, C_out), lambda b: (0, 0)),
            ],
            out_specs=pl.BlockSpec((b_tile, H_out, W_out, C_out),
                                   lambda b: (b, 0, 0, 0)),
        ),
        compiler_params=pltpu.CompilerParams(
            dimension_semantics=("parallel",),
            vmem_limit_bytes=48 * 1024 * 1024,
        ),
    )(x_pad, dw, pw, bias_pw)

    # NHWC -> NCHW to match the PyTorch module's output layout.
    return jnp.transpose(out_nhwc, (0, 3, 1, 2))


if __name__ == "__main__":
    N, C_in, C_out, H, W = 2, 4, 8, 16, 16
    eps = 1e-5

    key = jax.random.PRNGKey(0)
    k_x, k_dw, k_pw = jax.random.split(key, 3)

    x = jax.random.normal(k_x, (N, C_in, H, W), dtype=jnp.float32)
    # Depthwise Conv2d(C_in, C_in, 3, groups=C_in, bias=False): (C_in, 1, 3, 3)
    dw_weight = jax.random.normal(k_dw, (C_in, 1, 3, 3), dtype=jnp.float32) * 0.1
    # Pointwise Conv2d(C_in, C_out, 1, bias=False): (C_out, C_in, 1, 1)
    pw_weight = jax.random.normal(k_pw, (C_out, C_in, 1, 1), dtype=jnp.float32) * 0.1
    # BatchNorm2d(C_in) parameters (inference mode with running stats).
    gamma = 1.0 + 0.1 * jnp.arange(C_in, dtype=jnp.float32)
    beta = 0.05 * jnp.arange(C_in, dtype=jnp.float32) - 0.1
    running_mean = 0.01 * jnp.arange(C_in, dtype=jnp.float32)
    running_var = 1.0 + 0.02 * jnp.arange(C_in, dtype=jnp.float32)

    out = separable_conv2d(x, dw_weight, pw_weight, gamma, beta,
                           running_mean, running_var, eps=eps)
    out = jax.block_until_ready(out)

    # Pure-JAX reference in NCHW: explicit zero-pad + shifted sums (exact f32),
    # BN applied after the depthwise conv, pointwise at HIGHEST precision.
    xp = jnp.pad(x, ((0, 0), (0, 0), (1, 1), (1, 1)))
    dw_out = jnp.zeros((N, C_in, H, W), jnp.float32)
    for kh in range(3):
        for kw in range(3):
            dw_out = dw_out + (xp[:, :, kh:kh + H, kw:kw + W]
                               * dw_weight[:, 0, kh, kw][None, :, None, None])
    scale_ref = gamma / jnp.sqrt(running_var + eps)
    bn_out = (dw_out * scale_ref[None, :, None, None]
              + (beta - running_mean * scale_ref)[None, :, None, None])
    ref = jnp.einsum('nchw,oc->nohw', bn_out, pw_weight[:, :, 0, 0],
                     precision=jax.lax.Precision.HIGHEST)

    assert out.shape == (N, C_out, H, W)
    assert jnp.allclose(out, ref, atol=1e-3, rtol=1e-3), "mismatch vs reference"
    print("KERNEL_OK")
</pallas_src>

<mosaic_0001>
module attributes {stable_mosaic.version = 11 : i64} {
  func.func @_sepconv_kernel(%arg0: i32, %arg1: memref<2x18x18x4xf32, #tpu.memory_space<vmem>>, %arg2: memref<9x4xf32, #tpu.memory_space<vmem>>, %arg3: memref<4x8xf32, #tpu.memory_space<vmem>>, %arg4: memref<1x8xf32, #tpu.memory_space<vmem>>, %arg5: memref<2x16x16x8xf32, #tpu.memory_space<vmem>>) attributes {dimension_semantics = [#tpu.dimension_semantics<parallel>], iteration_bounds = array<i64: 1>, scalar_prefetch = 0 : i64, scratch_operands = 0 : i64, tpu.core_type = #tpu.core_type<tc>, window_params = [{transform_indices = @transform_0, window_bounds = array<i64: 2, 18, 18, 4>}, {pipeline_mode = #tpu.pipeline_mode<synchronous>, transform_indices = @transform_1, window_bounds = array<i64: 9, 4>}, {pipeline_mode = #tpu.pipeline_mode<synchronous>, transform_indices = @transform_2, window_bounds = array<i64: 4, 8>}, {pipeline_mode = #tpu.pipeline_mode<synchronous>, transform_indices = @transform_3, window_bounds = array<i64: 1, 8>}, {transform_indices = @transform_4, window_bounds = array<i64: 2, 16, 16, 8>}]} {
    %c0 = arith.constant 0 : index
    %c0_0 = arith.constant 0 : index
    %0 = vector.load %arg2[%c0, %c0_0] : memref<9x4xf32, #tpu.memory_space<vmem>>, vector<9x4xf32>
    %cst = arith.constant 0.000000e+00 : f32
    %1 = vector.broadcast %cst : f32 to vector<2x16x16x4xf32>
    %c0_1 = arith.constant 0 : index
    %c0_2 = arith.constant 0 : index
    %c0_3 = arith.constant 0 : index
    %c0_4 = arith.constant 0 : index
    %2 = vector.load %arg1[%c0_1, %c0_2, %c0_3, %c0_4] : memref<2x18x18x4xf32, #tpu.memory_space<vmem>>, vector<2x16x16x4xf32>
    %3 = vector.extract_strided_slice %0 {offsets = [0, 0], sizes = [1, 4], strides = [1, 1]} : vector<9x4xf32> to vector<1x4xf32>
    %4 = vector.shape_cast %3 : vector<1x4xf32> to vector<4xf32>
    %5 = vector.shape_cast %4 : vector<4xf32> to vector<1x1x1x4xf32>
    %6 = vector.broadcast %5 : vector<1x1x1x4xf32> to vector<2x16x16x4xf32>
    %7 = arith.mulf %2, %6 : vector<2x16x16x4xf32>
    %8 = arith.addf %1, %7 : vector<2x16x16x4xf32>
    %c0_5 = arith.constant 0 : index
    %c0_6 = arith.constant 0 : index
    %c1 = arith.constant 1 : index
    %c0_7 = arith.constant 0 : index
    %9 = vector.load %arg1[%c0_5, %c0_6, %c1, %c0_7] : memref<2x18x18x4xf32, #tpu.memory_space<vmem>>, vector<2x16x16x4xf32>
    %10 = vector.extract_strided_slice %0 {offsets = [1, 0], sizes = [1, 4], strides = [1, 1]} : vector<9x4xf32> to vector<1x4xf32>
    %11 = vector.shape_cast %10 : vector<1x4xf32> to vector<4xf32>
    %12 = vector.shape_cast %11 : vector<4xf32> to vector<1x1x1x4xf32>
    %13 = vector.broadcast %12 : vector<1x1x1x4xf32> to vector<2x16x16x4xf32>
    %14 = arith.mulf %9, %13 : vector<2x16x16x4xf32>
    %15 = arith.addf %8, %14 : vector<2x16x16x4xf32>
    %c0_8 = arith.constant 0 : index
    %c0_9 = arith.constant 0 : index
    %c2 = arith.constant 2 : index
    %c0_10 = arith.constant 0 : index
    %16 = vector.load %arg1[%c0_8, %c0_9, %c2, %c0_10] : memref<2x18x18x4xf32, #tpu.memory_space<vmem>>, vector<2x16x16x4xf32>
    %17 = vector.extract_strided_slice %0 {offsets = [2, 0], sizes = [1, 4], strides = [1, 1]} : vector<9x4xf32> to vector<1x4xf32>
    %18 = vector.shape_cast %17 : vector<1x4xf32> to vector<4xf32>
    %19 = vector.shape_cast %18 : vector<4xf32> to vector<1x1x1x4xf32>
    %20 = vector.broadcast %19 : vector<1x1x1x4xf32> to vector<2x16x16x4xf32>
    %21 = arith.mulf %16, %20 : vector<2x16x16x4xf32>
    %22 = arith.addf %15, %21 : vector<2x16x16x4xf32>
    %c0_11 = arith.constant 0 : index
    %c1_12 = arith.constant 1 : index
    %c0_13 = arith.constant 0 : index
    %c0_14 = arith.constant 0 : index
    %23 = vector.load %arg1[%c0_11, %c1_12, %c0_13, %c0_14] : memref<2x18x18x4xf32, #tpu.memory_space<vmem>>, vector<2x16x16x4xf32>
    %24 = vector.extract_strided_slice %0 {offsets = [3, 0], sizes = [1, 4], strides = [1, 1]} : vector<9x4xf32> to vector<1x4xf32>
    %25 = vector.shape_cast %24 : vector<1x4xf32> to vector<4xf32>
    %26 = vector.shape_cast %25 : vector<4xf32> to vector<1x1x1x4xf32>
    %27 = vector.broadcast %26 : vector<1x1x1x4xf32> to vector<2x16x16x4xf32>
    %28 = arith.mulf %23, %27 : vector<2x16x16x4xf32>
    %29 = arith.addf %22, %28 : vector<2x16x16x4xf32>
    %c0_15 = arith.constant 0 : index
    %c1_16 = arith.constant 1 : index
    %c1_17 = arith.constant 1 : index
    %c0_18 = arith.constant 0 : index
    %30 = vector.load %arg1[%c0_15, %c1_16, %c1_17, %c0_18] : memref<2x18x18x4xf32, #tpu.memory_space<vmem>>, vector<2x16x16x4xf32>
    %31 = vector.extract_strided_slice %0 {offsets = [4, 0], sizes = [1, 4], strides = [1, 1]} : vector<9x4xf32> to vector<1x4xf32>
    %32 = vector.shape_cast %31 : vector<1x4xf32> to vector<4xf32>
    %33 = vector.shape_cast %32 : vector<4xf32> to vector<1x1x1x4xf32>
    %34 = vector.broadcast %33 : vector<1x1x1x4xf32> to vector<2x16x16x4xf32>
    %35 = arith.mulf %30, %34 : vector<2x16x16x4xf32>
    %36 = arith.addf %29, %35 : vector<2x16x16x4xf32>
    %c0_19 = arith.constant 0 : index
    %c1_20 = arith.constant 1 : index
    %c2_21 = arith.constant 2 : index
    %c0_22 = arith.constant 0 : index
    %37 = vector.load %arg1[%c0_19, %c1_20, %c2_21, %c0_22] : memref<2x18x18x4xf32, #tpu.memory_space<vmem>>, vector<2x16x16x4xf32>
    %38 = vector.extract_strided_slice %0 {offsets = [5, 0], sizes = [1, 4], strides = [1, 1]} : vector<9x4xf32> to vector<1x4xf32>
    %39 = vector.shape_cast %38 : vector<1x4xf32> to vector<4xf32>
    %40 = vector.shape_cast %39 : vector<4xf32> to vector<1x1x1x4xf32>
    %41 = vector.broadcast %40 : vector<1x1x1x4xf32> to vector<2x16x16x4xf32>
    %42 = arith.mulf %37, %41 : vector<2x16x16x4xf32>
    %43 = arith.addf %36, %42 : vector<2x16x16x4xf32>
    %c0_23 = arith.constant 0 : index
    %c2_24 = arith.constant 2 : index
    %c0_25 = arith.constant 0 : index
    %c0_26 = arith.constant 0 : index
    %44 = vector.load %arg1[%c0_23, %c2_24, %c0_25, %c0_26] : memref<2x18x18x4xf32, #tpu.memory_space<vmem>>, vector<2x16x16x4xf32>
    %45 = vector.extract_strided_slice %0 {offsets = [6, 0], sizes = [1, 4], strides = [1, 1]} : vector<9x4xf32> to vector<1x4xf32>
    %46 = vector.shape_cast %45 : vector<1x4xf32> to vector<4xf32>
    %47 = vector.shape_cast %46 : vector<4xf32> to vector<1x1x1x4xf32>
    %48 = vector.broadcast %47 : vector<1x1x1x4xf32> to vector<2x16x16x4xf32>
    %49 = arith.mulf %44, %48 : vector<2x16x16x4xf32>
    %50 = arith.addf %43, %49 : vector<2x16x16x4xf32>
    %c0_27 = arith.constant 0 : index
    %c2_28 = arith.constant 2 : index
    %c1_29 = arith.constant 1 : index
    %c0_30 = arith.constant 0 : index
    %51 = vector.load %arg1[%c0_27, %c2_28, %c1_29, %c0_30] : memref<2x18x18x4xf32, #tpu.memory_space<vmem>>, vector<2x16x16x4xf32>
    %52 = vector.extract_strided_slice %0 {offsets = [7, 0], sizes = [1, 4], strides = [1, 1]} : vector<9x4xf32> to vector<1x4xf32>
    %53 = vector.shape_cast %52 : vector<1x4xf32> to vector<4xf32>
    %54 = vector.shape_cast %53 : vector<4xf32> to vector<1x1x1x4xf32>
    %55 = vector.broadcast %54 : vector<1x1x1x4xf32> to vector<2x16x16x4xf32>
    %56 = arith.mulf %51, %55 : vector<2x16x16x4xf32>
    %57 = arith.addf %50, %56 : vector<2x16x16x4xf32>
    %c0_31 = arith.constant 0 : index
    %c2_32 = arith.constant 2 : index
    %c2_33 = arith.constant 2 : index
    %c0_34 = arith.constant 0 : index
    %58 = vector.load %arg1[%c0_31, %c2_32, %c2_33, %c0_34] : memref<2x18x18x4xf32, #tpu.memory_space<vmem>>, vector<2x16x16x4xf32>
    %59 = vector.extract_strided_slice %0 {offsets = [8, 0], sizes = [1, 4], strides = [1, 1]} : vector<9x4xf32> to vector<1x4xf32>
    %60 = vector.shape_cast %59 : vector<1x4xf32> to vector<4xf32>
    %61 = vector.shape_cast %60 : vector<4xf32> to vector<1x1x1x4xf32>
    %62 = vector.broadcast %61 : vector<1x1x1x4xf32> to vector<2x16x16x4xf32>
    %63 = arith.mulf %58, %62 : vector<2x16x16x4xf32>
    %64 = arith.addf %57, %63 : vector<2x16x16x4xf32>
    %65 = vector.shape_cast %64 : vector<2x16x16x4xf32> to vector<512x4xf32>
    %c0_35 = arith.constant 0 : index
    %c0_36 = arith.constant 0 : index
    %66 = vector.load %arg3[%c0_35, %c0_36] : memref<4x8xf32, #tpu.memory_space<vmem>>, vector<4x8xf32>
    %cst_37 = arith.constant dense<0.000000e+00> : vector<512x8xf32>
    %67 = tpu.matmul %65, %66, %cst_37 {dimension_numbers = #tpu.dot_dimension_numbers<[1], [0], [0], [1], [0, 0, 1, 1], [], []>} : vector<512x4xf32>, vector<4x8xf32>, vector<512x8xf32> -> vector<512x8xf32>
    %c0_38 = arith.constant 0 : index
    %c0_39 = arith.constant 0 : index
    %68 = vector.load %arg4[%c0_38, %c0_39] : memref<1x8xf32, #tpu.memory_space<vmem>>, vector<1x8xf32>
    %69 = vector.broadcast %68 : vector<1x8xf32> to vector<512x8xf32>
    %70 = arith.addf %67, %69 : vector<512x8xf32>
    %71 = vector.shape_cast %70 : vector<512x8xf32> to vector<2x16x16x8xf32>
    %c0_40 = arith.constant 0 : index
    %c0_41 = arith.constant 0 : index
    %c0_42 = arith.constant 0 : index
    %c0_43 = arith.constant 0 : index
    %72 = vector.load %arg5[%c0_40, %c0_41, %c0_42, %c0_43] : memref<2x16x16x8xf32, #tpu.memory_space<vmem>>, vector<2x16x16x8xf32>
    tpu.vector_store %arg5[%c0_40, %c0_41, %c0_42, %c0_43], %71 {strides = array<i32>} : memref<2x16x16x8xf32, #tpu.memory_space<vmem>>, vector<2x16x16x8xf32>,
    return
  }
  func.func @transform_0(%arg0: i32) -> (i32, i32, i32, i32) {
    %c0_i32 = arith.constant 0 : i32
    %c0_i32_0 = arith.constant 0 : i32
    %c0_i32_1 = arith.constant 0 : i32
    %c0_i32_2 = arith.constant 0 : i32
    return %arg0, %c0_i32, %c0_i32_0, %c0_i32_1 : i32, i32, i32, i32
  }
  func.func @transform_1(%arg0: i32) -> (i32, i32) {
    %c0_i32 = arith.constant 0 : i32
    %c0_i32_0 = arith.constant 0 : i32
    %c0_i32_1 = arith.constant 0 : i32
    return %c0_i32, %c0_i32_0 : i32, i32
  }
  func.func @transform_2(%arg0: i32) -> (i32, i32) {
    %c0_i32 = arith.constant 0 : i32
    %c0_i32_0 = arith.constant 0 : i32
    %c0_i32_1 = arith.constant 0 : i32
    return %c0_i32, %c0_i32_0 : i32, i32
  }
  func.func @transform_3(%arg0: i32) -> (i32, i32) {
    %c0_i32 = arith.constant 0 : i32
    %c0_i32_0 = arith.constant 0 : i32
    %c0_i32_1 = arith.constant 0 : i32
    return %c0_i32, %c0_i32_0 : i32, i32
  }
  func.func @transform_4(%arg0: i32) -> (i32, i32, i32, i32) {
    %c0_i32 = arith.constant 0 : i32
    %c0_i32_0 = arith.constant 0 : i32
    %c0_i32_1 = arith.constant 0 : i32
    %c0_i32_2 = arith.constant 0 : i32
    return %arg0, %c0_i32, %c0_i32_0, %c0_i32_1 : i32, i32, i32, i32
  }
}

</mosaic_0001>

<bundles_post_ra>
// kernel: tpu_custom_call.1
= control target key start
LH: loop header
LB: loop body
LE: loop exit
PB: predicated region body
PF: predicated region fallthrough
CT: control target
= control target key end

     0   :  { %vm1986_vm0 = vcmask 1043456   ;;  %v83_v0 = vlaneseq  ;;  %vm1793_vm1 = vcmask 31744   ;;  %vm2375_vm2 = vcmask 64512   ;;  %s5709_s2 = inlined_call_operand.vmem [shape: f32[4,8], index: 2, kind: input, shape index: {}]   ;;  %s5710_s1 = inlined_call_operand.vmem [shape: f32[9,4], index: 1, kind: input, shape index: {}]   ;;  %s5711_s0 = inlined_call_operand.vmem [shape: f32[2,18,18,4], index: 0, kind: input, shape index: {}]   ;;  %s5712_s3 = inlined_call_operand.vmem [shape: f32[1,8], index: 3, kind: input, shape index: {}]   ;;  %s5713_s4 = inlined_call_operand.vmem [shape: f32[2,16,16,8], index: 4, kind: output, shape index: {}]  }
   0x1   :  { %v1785_v1 = vld [vmem:[%s5709_s2] sm:$0xf]  ;;  %v3105_v15 = vld [vmem:[%s5710_s1 + $0x8] ss:$0 sm:$0xff]  ;;  %v3116_v19 = vld [vmem:[%s5711_s0 + $0x18] sm:$0xff] }
   0x2   :  { %2960 = vmatprep.subr.msk.mxu0 %vm1986_vm0, %v1785_v1  ;;  %3058 = vmatprep.subr.msk.mxu1 %vm1986_vm0, %v1785_v1  ;;  %v84_v2 = vshrl.u32 %v83_v0, 7  ;;  %v17_v3 = vld [vmem:[%s5710_s1] sm:$0xff]  ;;  %v51_v26 = vld [vmem:[%s5711_s0 + $0x1b0] sm:$0xff]  ;;  %v3153_v33 = vld [vmem:[%s5711_s0 + $0x1c8] sm:$0xff] }
   0x3   :  { %2961 = vmatpush3.msk.msra.mxu0 %vm1986_vm0, %v1785_v1  ;;  %3059 = vmatpush3.msk.msra.mxu1 %vm1986_vm0, %v1785_v1  ;;  %v19_v4 = vld [vmem:[%s5711_s0] sm:$0xff]  ;;  %v247_v27 = vld [vmem:[%s5711_s0 + $0x1b1] sm:$0xff]  ;;  %v20_v44 = vld [vmem:[%s5711_s0 + $0x8] sm:$0xff] }
   0x4   :  { %v85_v5 = vsub.s32 0, %v84_v2  ;;  %v281_v6 = vsub.s32 1, %v84_v2  ;;  %v477_v7 = vsub.s32 2, %v84_v2  ;;  %v674_v8 = vsub.s32 3, %v84_v2  ;;  %v215_v9 = vld [vmem:[%s5711_s0 + $0x1] sm:$0xff]  ;;  %v3123_v21 = vld [vmem:[%s5711_s0 + $0x19] sm:$0xff] }
   0x5   :  { %v411_v10 = vld [vmem:[%s5711_s0 + $0x2] sm:$0xff]  ;;  %v870_v11 = vsub.s32 4, %v84_v2  ;;  %v1066_v12 = vsub.s32 5, %v84_v2  ;;  %v1263_v13 = vsub.s32 6, %v84_v2  ;;  %v1459_v14 = vsub.s32 7, %v84_v2  ;;  %v3145_v31 = vld [vmem:[%s5711_s0 + $0x1a] sm:$0xff] }
   0x6   :  { %v3107_v16 = vrot.slane %v17_v3, %v85_v5  ;;  %v3109_v17 = vrot.slane %v17_v3, %v281_v6  ;;  %v3111_v18 = vrot.slane %v17_v3, %v477_v7  ;;  %v3118_v20 = vrot.slane %v17_v3, %v674_v8  ;;  %v443_v32 = vld [vmem:[%s5711_s0 + $0x1b2] sm:$0xff]  ;;  %v216_v45 = vld [vmem:[%s5711_s0 + $0x9] sm:$0xff]  ;;  %v3217_v57 = vld [vmem:[%s5711_s0 + $0x1e0] sm:$0xff] }
   0x7   :  { %v3125_v22 = vrot.slane %v17_v3, %v870_v11  ;;  %v3127_v23 = vrot.slane %v17_v3, %v1066_v12  ;;  %v3129_v24 = vrot.slane %v17_v3, %v1263_v13  ;;  %v3131_v25 = vrot.slane %v17_v3, %v1459_v14  ;;  %v3164_v37 = vld [vmem:[%s5711_s0 + $0x30] sm:$0xff]  ;;  %v3222_v58 = vld [vmem:[%s5711_s0 + $0x1e1] sm:$0xff]  ;;  %v52_v2 = vld [vmem:[%s5711_s0 + $0x1b8] sm:$0xff] }
   0x8   :  { %v87_v28 = vmul.f32 %v3107_v16, %v19_v4  ;;  %v283_v29 = vmul.f32 %v3109_v17, %v215_v9  ;;  %v479_v30 = vmul.f32 %v3111_v18, %v411_v10  ;;  %v676_v34 = vmul.f32 %v3116_v19, %v3118_v20  ;;  %v3169_v38 = vld [vmem:[%s5711_s0 + $0x31] sm:$0xff]  ;;  %v3203_v51 = vld [vmem:[%s5711_s0 + $0x1c9] sm:$0xff]  ;;  %v3227_v59 = vld [vmem:[%s5711_s0 + $0x20] sm:$0xff] }
   0x9   :  { %v872_v35 = vmul.f32 %v3123_v21, %v3125_v22  ;;  %v1068_v36 = vmul.f32 %v3145_v31, %v3127_v23  ;;  %v3174_v39 = vld [vmem:[%s5711_s0 + $0x32] sm:$0xff]  ;;  %v1265_v41 = vmul.f32 %v3164_v37, %v3129_v24  ;;  %v119_v42 = vmul.f32 %v3107_v16, %v51_v26  ;;  %v412_v46 = vld [vmem:[%s5711_s0 + $0xa] sm:$0xff]  ;;  %v3234_v61 = vld [vmem:[%s5711_s0 + $0x1e2] sm:$0xff] }
   0xa   :  { %v347_v40 = vadd.f32 %v283_v29, %v87_v28  ;;  %v315_v43 = vmul.f32 %v3109_v17, %v247_v27  ;;  %v3191_v47 = vmul.f32 %v3169_v38, %v3131_v25  ;;  %v3195_v48 = vmul.f32 %v3105_v15, %v3174_v39  ;;  %v3208_v52 = vld [vmem:[%s5711_s0 + $0x1ca] sm:$0xff]  ;;  %v3242_v1 = vld [vmem:[%s5711_s0 + $0x21] sm:$0xff]  ;;  %v248_v8 = vld [vmem:[%s5711_s0 + $0x1b9] sm:$0xff] }
   0xb   :  { %v511_v49 = vmul.f32 %v3111_v18, %v443_v32  ;;  %v708_v50 = vmul.f32 %v3153_v33, %v3118_v20  ;;  %v904_v55 = vmul.f32 %v3203_v51, %v3125_v22  ;;  %v1100_v56 = vmul.f32 %v3208_v52, %v3127_v23  ;;  %v3254_v7 = vld [vmem:[%s5711_s0 + $0x22] sm:$0xff]  ;;  %v444_v9 = vld [vmem:[%s5711_s0 + $0x1ba] sm:$0xff]  ;;  %v3276_v26 = vld [vmem:[%s5711_s0 + $0x1d0] sm:$0xff] }
   0xc   :  { %v543_v53 = vadd.f32 %v479_v30, %v347_v40  ;;  %v379_v54 = vadd.f32 %v315_v43, %v119_v42  ;;  %v1297_v60 = vmul.f32 %v3217_v57, %v3129_v24  ;;  %v88_v62 = vmul.f32 %v3107_v16, %v20_v44  ;;  %v3271_v14 = vld [vmem:[%s5711_s0 + $0x38] sm:$0xff] }
   0xd   :  { %v284_v63 = vmul.f32 %v3109_v17, %v216_v45  ;;  %v480_v0 = vmul.f32 %v3111_v18, %v412_v46  ;;  %v1493_v5 = vmul.f32 %v3222_v58, %v3131_v25  ;;  %v1689_v6 = vmul.f32 %v3105_v15, %v3234_v61  ;;  %v3283_v30 = vld [vmem:[%s5711_s0 + $0x39] sm:$0xff] }
   0xe   :  { %v740_v3 = vadd.f32 %v676_v34, %v543_v53  ;;  %v575_v4 = vadd.f32 %v511_v49, %v379_v54  ;;  %v677_v11 = vmul.f32 %v3227_v59, %v3118_v20  ;;  %v873_v12 = vmul.f32 %v3242_v1, %v3125_v22  ;;  %v3291_v42 = vld [vmem:[%s5711_s0 + $0x3a] sm:$0xff]  ;;  %v3307_v53 = vld [vmem:[%s5711_s0 + $0x1d2] sm:$0xff] }
   0xf   :  { %v348_v10 = vadd.f32 %v284_v63, %v88_v62  ;;  %v1069_v13 = vmul.f32 %v3254_v7, %v3127_v23  ;;  %v1266_v29 = vmul.f32 %v3271_v14, %v3129_v24  ;;  %v120_v32 = vmul.f32 %v3107_v16, %v52_v2  ;;  %v3316_v63 = vld [vmem:[%s5711_s0 + $0x1e8] sm:$0xff] }
  0x10   :  { %v936_v27 = vadd.f32 %v872_v35, %v740_v3  ;;  %v772_v28 = vadd.f32 %v708_v50, %v575_v4  ;;  %v1462_v40 = vmul.f32 %v3283_v30, %v3131_v25  ;;  %v316_v35 = vmul.f32 %v3109_v17, %v248_v8  ;;  %v3302_v50 = vld [vmem:[%s5711_s0 + $0x1d1] sm:$0xff] }
  0x11   :  { %v544_v34 = vadd.f32 %v480_v0, %v348_v10  ;;  %v512_v43 = vmul.f32 %v3111_v18, %v444_v9  ;;  %v1658_v46 = vmul.f32 %v3105_v15, %v3291_v42  ;;  %v709_v49 = vmul.f32 %v3276_v26, %v3118_v20  ;;  %v3325_v10 = vld [vmem:[%s5711_s0 + $0x1e9] sm:$0xff] }
  0x12   :  { %v1132_v44 = vadd.f32 %v1068_v36, %v936_v27  ;;  %v968_v45 = vadd.f32 %v904_v55, %v772_v28  ;;  %v380_v62 = vadd.f32 %v316_v35, %v120_v32  ;;  %v905_v36 = vmul.f32 %v3302_v50, %v3125_v22 }
  0x13   :  { %v741_v54 = vadd.f32 %v677_v11, %v544_v34  ;;  %v1101_v55 = vmul.f32 %v3307_v53, %v3127_v23  ;;  %v1298_v3 = vmul.f32 %v3316_v63, %v3129_v24  ;;  %v89_v4 = vmul.f32 %v3116_v19, %v3107_v16  ;;  %v3330_v11 = vld [vmem:[%s5711_s0 + $0x1ea] sm:$0xff] }
  0x14   :  { %v1329_v0 = vadd.f32 %v1265_v41, %v1132_v44  ;;  %v1164_v2 = vadd.f32 %v1100_v56, %v968_v45  ;;  %v576_v9 = vadd.f32 %v512_v43, %v380_v62  ;;  %v285_v41 = vmul.f32 %v3123_v21, %v3109_v17 }
  0x15   :  { %v937_v8 = vadd.f32 %v873_v12, %v741_v54  ;;  %v481_v56 = vmul.f32 %v3145_v31, %v3111_v18  ;;  %v1494_v27 = vmul.f32 %v3325_v10, %v3131_v25  ;;  %v1690_v28 = vmul.f32 %v3105_v15, %v3330_v11 }
  0x16   :  { %v1525_v19 = vadd.f32 %v3191_v47, %v1329_v0  ;;  %v1361_v12 = vadd.f32 %v1297_v60, %v1164_v2  ;;  %v773_v34 = vadd.f32 %v709_v49, %v576_v9  ;;  %v349_v35 = vadd.f32 %v285_v41, %v89_v4  ;;  %v3351_v60 = vld [vmem:[%s5711_s0 + $0x48] sm:$0xff] }
  0x17   :  { %v1133_v32 = vadd.f32 %v1069_v13, %v937_v8  ;;  %v678_v43 = vmul.f32 %v3164_v37, %v3118_v20  ;;  %v874_v31 = vmul.f32 %v3169_v38, %v3125_v22  ;;  %v1070_v47 = vmul.f32 %v3174_v39, %v3127_v23  ;;  %v3372_v8 = vld [vmem:[%s5711_s0 + $0x4a] sm:$0xff] }
  0x18   :  { %v1721_v21 = vadd.f32 %v3195_v48, %v1525_v19  ;;  %v1557_v44 = vadd.f32 %v1493_v5, %v1361_v12  ;;  %v969_v45 = vadd.f32 %v905_v36, %v773_v34  ;;  %v545_v49 = vadd.f32 %v481_v56, %v349_v35  ;;  %v3359_v5 = vld [vmem:[%s5711_s0 + $0x49] sm:$0xff]  ;;  %v3386_v19 = vld [vmem:[%s5711_s0 + $0x1f8] sm:$0xff] }
  0x19   :  { %v1330_v13 = vadd.f32 %v1266_v29, %v1133_v32  ;;  %v1267_v54 = vmul.f32 %v3351_v60, %v3129_v24  ;;  %v121_v62 = vmul.f32 %v3153_v33, %v3107_v16  ;;  %v317_v0 = vmul.f32 %v3203_v51, %v3109_v17  ;;  %v3393_v34 = vld [vmem:[%s5711_s0 + $0x1f9] sm:$0xff] }
  0x1a   :  { %2962 = vmatprep.mubr.msk.f32.mxu0 %vm1793_vm1, %v1721_v21  ;;  %v1753_v48 = vadd.f32 %v1689_v6, %v1557_v44  ;;  %v513_v29 = vmul.f32 %v3208_v52, %v3111_v18  ;;  %v1165_v2 = vadd.f32 %v1101_v55, %v969_v45  ;;  %v742_v4 = vadd.f32 %v678_v43, %v545_v49  ;;  %v3405_v44 = vld [vmem:[%s5711_s0 + $0x1fa] sm:$0xff] }
  0x1b   :  { %v1526_v36 = vadd.f32 %v1462_v40, %v1330_v13  ;;  %v1463_v6 = vmul.f32 %v3359_v5, %v3131_v25  ;;  %v1659_v33 = vmul.f32 %v3105_v15, %v3372_v8  ;;  %v381_v51 = vadd.f32 %v317_v0, %v121_v62 }
  0x1c   :  { %3010 = vmatprep.mubr.msk.f32.mxu1 %vm1793_vm1, %v1753_v48  ;;  %v710_v52 = vmul.f32 %v3217_v57, %v3118_v20  ;;  %v906_v40 = vmul.f32 %v3222_v58, %v3125_v22  ;;  %v1362_v9 = vadd.f32 %v1298_v3, %v1165_v2  ;;  %v938_v41 = vadd.f32 %v874_v31, %v742_v4  ;;  %v3437_v4 = vld [vmem:[%s5711_s0 + $0x52] sm:$0xff] }
  0x1d   :  { %v1722_v55 = vadd.f32 %v1658_v46, %v1526_v36  ;;  %v1102_v56 = vmul.f32 %v3234_v61, %v3127_v23  ;;  %v577_v12 = vadd.f32 %v513_v29, %v381_v51  ;;  %v1299_v32 = vmul.f32 %v3386_v19, %v3129_v24 }
  0x1e   :  { %v90_v46 = vmul.f32 %v3227_v59, %v3107_v16  ;;  %v286_v3 = vmul.f32 %v3242_v1, %v3109_v17  ;;  %v1558_v35 = vadd.f32 %v1494_v27, %v1362_v9  ;;  %v1134_v43 = vadd.f32 %v1070_v47, %v938_v41 }
  0x1f   :  { %2963 = vmatmul.mubr.msk.f32.vlgmr.msra.gmra.mxu0 %vm1793_vm1, %v1722_v55  ;;  %v1495_v21 = vmul.f32 %v3393_v34, %v3131_v25  ;;  %v482_v31 = vmul.f32 %v3254_v7, %v3111_v18  ;;  %v774_v13 = vadd.f32 %v710_v52, %v577_v12  ;;  %v1691_v59 = vmul.f32 %v3105_v15, %v3405_v44  ;;  %v3420_v7 = vld [vmem:[%s5711_s0 + $0x50] sm:$0xff] }
  0x20   :  { %v350_v1 = vadd.f32 %v286_v3, %v90_v46  ;;  %v679_v27 = vmul.f32 %v3271_v14, %v3118_v20  ;;  %v1754_v47 = vadd.f32 %v1690_v28, %v1558_v35  ;;  %v1331_v45 = vadd.f32 %v1267_v54, %v1134_v43  ;;  %v3427_v28 = vld [vmem:[%s5711_s0 + $0x51] sm:$0xff] }
  0x21   :  { %v875_v49 = vmul.f32 %v3283_v30, %v3125_v22  ;;  %v1071_v48 = vmul.f32 %v3291_v42, %v3127_v23  ;;  %v970_v62 = vadd.f32 %v906_v40, %v774_v13  ;;  %v1268_v29 = vmul.f32 %v3420_v7, %v3129_v24 }
  0x22   :  { %v546_v0 = vadd.f32 %v482_v31, %v350_v1  ;;  %v122_v54 = vmul.f32 %v3276_v26, %v3107_v16  ;;  %3011 = vmatmul.mubr.msk.f32.vlgmr.msra.gmra.mxu1 %vm1793_vm1, %v1754_v47  ;;  %v1527_v36 = vadd.f32 %v1463_v6, %v1331_v45  ;;  %v1464_v2 = vmul.f32 %v3427_v28, %v3131_v25 }
  0x23   :  { %v318_v51 = vmul.f32 %v3302_v50, %v3109_v17  ;;  %v514_v52 = vmul.f32 %v3307_v53, %v3111_v18  ;;  %v1166_v40 = vadd.f32 %v1102_v56, %v970_v62  ;;  %v1660_v26 = vmul.f32 %v3105_v15, %v3437_v4  ;;  %v3454_v50 = vld [vmem:[%s5711_s0 + $0x200] sm:$0xff] }
  0x24   :  { %v743_v55 = vadd.f32 %v679_v27, %v546_v0  ;;  %v711_v6 = vmul.f32 %v3316_v63, %v3118_v20  ;;  %v1723_v9 = vadd.f32 %v1659_v33, %v1527_v36  ;;  %v907_v12 = vmul.f32 %v3325_v10, %v3125_v22  ;;  %v3461_v33 = vld [vmem:[%s5711_s0 + $0x201] sm:$0xff] }
  0x25   :  { %v382_v41 = vadd.f32 %v318_v51, %v122_v54  ;;  %v1103_v46 = vmul.f32 %v3330_v11, %v3127_v23  ;;  %v1363_v53 = vadd.f32 %v1299_v32, %v1166_v40  ;;  %v1300_v3 = vmul.f32 %v3454_v50, %v3129_v24  ;;  %v3471_v32 = vld [vmem:[%s5711_s0 + $0x202] sm:$0xff] }
  0x26   :  { %v939_v56 = vadd.f32 %v875_v49, %v743_v55  ;;  %v91_v35 = vmul.f32 %v3164_v37, %v3107_v16  ;;  %2965 = vmatprep.mubr.msk.f32.mxu0 %vm1793_vm1, %v1723_v9  ;;  %v1496_v31 = vmul.f32 %v3461_v33, %v3131_v25  ;;  %v287_v13 = vmul.f32 %v3169_v38, %v3109_v17  ;;  %v3488_v38 = vld [vmem:[%s5711_s0 + $0x60] sm:$0xff] }
  0x27   :  { %v578_v43 = vadd.f32 %v514_v52, %v382_v41  ;;  %v483_v1 = vmul.f32 %v3174_v39, %v3111_v18  ;;  %v1559_v27 = vadd.f32 %v1495_v21, %v1363_v53  ;;  %v1692_v37 = vmul.f32 %v3105_v15, %v3471_v32  ;;  %v3497_v40 = vld [vmem:[%s5711_s0 + $0x61] sm:$0xff] }
  0x28   :  { %v1135_v47 = vadd.f32 %v1071_v48, %v939_v56  ;;  %v680_v45 = vmul.f32 %v3351_v60, %v3118_v20  ;;  %v351_v62 = vadd.f32 %v287_v13, %v91_v35  ;;  %v876_v0 = vmul.f32 %v3359_v5, %v3125_v22  ;;  %v3502_v55 = vld [vmem:[%s5711_s0 + $0x62] sm:$0xff] }
  0x29   :  { %v775_v49 = vadd.f32 %v711_v6, %v578_v43  ;;  %v1072_v54 = vmul.f32 %v3372_v8, %v3127_v23  ;;  %v1755_v39 = vadd.f32 %v1691_v59, %v1559_v27  ;;  %v1269_v48 = vmul.f32 %v3488_v38, %v3129_v24 }
  0x2a   :  { %v1332_v21 = vadd.f32 %v1268_v29, %v1135_v47  ;;  %v123_v36 = vmul.f32 %v3217_v57, %v3107_v16  ;;  %v547_v52 = vadd.f32 %v483_v1, %v351_v62  ;;  %v319_v59 = vmul.f32 %v3222_v58, %v3109_v17  ;;  %v3531_v47 = vld [vmem:[%s5711_s0 + $0x211] sm:$0xff] }
  0x2b   :  { %v971_v51 = vadd.f32 %v907_v12, %v775_v49  ;;  %v515_v29 = vmul.f32 %v3234_v61, %v3111_v18  ;;  %3013 = vmatprep.mubr.msk.f32.mxu1 %vm1793_vm1, %v1755_v39  ;;  %v1465_v6 = vmul.f32 %v3497_v40, %v3131_v25  ;;  %v1661_v9 = vmul.f32 %v3105_v15, %v3502_v55  ;;  %v3520_v61 = vld [vmem:[%s5711_s0 + $0x210] sm:$0xff] }
  0x2c   :  { %v1528_v57 = vadd.f32 %v1464_v2, %v1332_v21  ;;  %v712_v41 = vmul.f32 %v3386_v19, %v3118_v20  ;;  %v744_v53 = vadd.f32 %v680_v45, %v547_v52  ;;  %v383_v56 = vadd.f32 %v319_v59, %v123_v36 }
  0x2d   :  { %v1167_v12 = vadd.f32 %v1103_v46, %v971_v51  ;;  %v908_v58 = vmul.f32 %v3393_v34, %v3125_v22  ;;  %v1104_v35 = vmul.f32 %v3405_v44, %v3127_v23  ;;  %v1301_v43 = vmul.f32 %v3520_v61, %v3129_v24 }
  0x2e   :  { %v1724_v2 = vadd.f32 %v1660_v26, %v1528_v57  ;;  %v92_v46 = vmul.f32 %v3271_v14, %v3107_v16  ;;  %v940_v1 = vadd.f32 %v876_v0, %v744_v53  ;;  %v579_v27 = vadd.f32 %v515_v29, %v383_v56  ;;  %v3536_v26 = vld [vmem:[%s5711_s0 + $0x212] sm:$0xff] }
  0x2f   :  { %v1364_v13 = vadd.f32 %v1300_v3, %v1167_v12  ;;  %v288_v45 = vmul.f32 %v3283_v30, %v3109_v17  ;;  %v1497_v14 = vmul.f32 %v3531_v47, %v3131_v25  ;;  %v1693_v3 = vmul.f32 %v3105_v15, %v3536_v26  ;;  %v3552_v30 = vld [vmem:[%s5711_s0 + $0x68] sm:$0xff] }
  0x30   :  { %2966 = vmatmul.mubr.msk.f32.gmra.mxu0 %vm1793_vm1, %v1724_v2  ;;  %v484_v49 = vmul.f32 %v3291_v42, %v3111_v18  ;;  %v681_v62 = vmul.f32 %v3420_v7, %v3118_v20  ;;  %v1136_v39 = vadd.f32 %v1072_v54, %v940_v1  ;;  %v776_v21 = vadd.f32 %v712_v41, %v579_v27  ;;  %v3565_v41 = vld [vmem:[%s5711_s0 + $0x69] sm:$0xff] }
  0x31   :  { %v1560_v0 = vadd.f32 %v1496_v31, %v1364_v13  ;;  %v352_v36 = vadd.f32 %v288_v45, %v92_v46  ;;  %v877_v51 = vmul.f32 %v3427_v28, %v3125_v22  ;;  %v1073_v52 = vmul.f32 %v3437_v4, %v3127_v23  ;;  %v3570_v12 = vld [vmem:[%s5711_s0 + $0x6a] sm:$0xff]  ;;  %v3586_v13 = vld [vmem:[%s5711_s0 + $0x218] sm:$0xff] }
  0x32   :  { %v1270_v42 = vmul.f32 %v3552_v30, %v3129_v24  ;;  %v124_v31 = vmul.f32 %v3316_v63, %v3107_v16  ;;  %v1333_v59 = vadd.f32 %v1269_v48, %v1136_v39  ;;  %v972_v29 = vadd.f32 %v908_v58, %v776_v21  ;;  %v3606_v21 = vld [vmem:[%s5711_s0 + $0x21a] sm:$0xff] }
  0x33   :  { %v1756_v54 = vadd.f32 %v1692_v37, %v1560_v0  ;;  %v548_v57 = vadd.f32 %v484_v49, %v352_v36  ;;  %v1466_v53 = vmul.f32 %v3565_v41, %v3131_v25  ;;  %v1662_v63 = vmul.f32 %v3105_v15, %v3570_v12  ;;  %v3597_v49 = vld [vmem:[%s5711_s0 + $0x219] sm:$0xff] }
  0x34   :  { %v320_v37 = vmul.f32 %v3325_v10, %v3109_v17  ;;  %v516_v48 = vmul.f32 %v3330_v11, %v3111_v18  ;;  %v1529_v56 = vadd.f32 %v1465_v6, %v1333_v59  ;;  %v1168_v58 = vadd.f32 %v1104_v35, %v972_v29 }
  0x35   :  { %3014 = vmatmul.mubr.msk.f32.gmra.mxu1 %vm1793_vm1, %v1756_v54  ;;  %v745_v2 = vadd.f32 %v681_v62, %v548_v57  ;;  %v713_v46 = vmul.f32 %v3454_v50, %v3118_v20  ;;  %v909_v10 = vmul.f32 %v3461_v33, %v3125_v22  ;;  %v1105_v11 = vmul.f32 %v3471_v32, %v3127_v23 }
  0x36   :  { %v384_v1 = vadd.f32 %v320_v37, %v124_v31  ;;  %v1302_v6 = vmul.f32 %v3586_v13, %v3129_v24  ;;  %v1725_v35 = vadd.f32 %v1661_v9, %v1529_v56  ;;  %v1365_v27 = vadd.f32 %v1301_v43, %v1168_v58  ;;  %v3633_v58 = vld [vmem:[%s5711_s0 + $0x79] sm:$0xff] }
  0x37   :  { %v941_v45 = vadd.f32 %v877_v51, %v745_v2  ;;  %v93_v62 = vmul.f32 %v3351_v60, %v3107_v16  ;;  %v1498_v39 = vmul.f32 %v3597_v49, %v3131_v25  ;;  %v289_v9 = vmul.f32 %v3359_v5, %v3109_v17  ;;  %v3638_v2 = vld [vmem:[%s5711_s0 + $0x7a] sm:$0xff] }
  0x38   :  { %v580_v0 = vadd.f32 %v516_v48, %v384_v1  ;;  %v485_v43 = vmul.f32 %v3372_v8, %v3111_v18  ;;  %2968 = vmatprep.mubr.msk.f32.mxu0 %vm1793_vm1, %v1725_v35  ;;  %v1561_v36 = vadd.f32 %v1497_v14, %v1365_v27  ;;  %v1694_v60 = vmul.f32 %v3105_v15, %v3606_v21  ;;  %v3624_v8 = vld [vmem:[%s5711_s0 + $0x78] sm:$0xff] }
  0x39   :  { %v1137_v51 = vadd.f32 %v1073_v52, %v941_v45  ;;  %v682_v31 = vmul.f32 %v3488_v38, %v3118_v20  ;;  %v353_v59 = vadd.f32 %v289_v9, %v93_v62  ;;  %v878_v29 = vmul.f32 %v3497_v40, %v3125_v22 }
  0x3a   :  { %v777_v54 = vadd.f32 %v713_v46, %v580_v0  ;;  %v1074_v5 = vmul.f32 %v3502_v55, %v3127_v23  ;;  %v1757_v14 = vadd.f32 %v1693_v3, %v1561_v36  ;;  %v1271_v57 = vmul.f32 %v3624_v8, %v3129_v24 }
  0x3b   :  { %v1334_v52 = vadd.f32 %v1270_v42, %v1137_v51  ;;  %v125_v37 = vmul.f32 %v3386_v19, %v3107_v16  ;;  %v549_v56 = vadd.f32 %v485_v43, %v353_v59  ;;  %v321_v3 = vmul.f32 %v3393_v34, %v3109_v17  ;;  %v3667_v51 = vld [vmem:[%s5711_s0 + $0x229] sm:$0xff] }
  0x3c   :  { %v973_v48 = vadd.f32 %v909_v10, %v777_v54  ;;  %v517_v42 = vmul.f32 %v3405_v44, %v3111_v18  ;;  %3016 = vmatprep.mubr.msk.f32.mxu1 %vm1793_vm1, %v1757_v14  ;;  %v1467_v46 = vmul.f32 %v3633_v58, %v3131_v25  ;;  %v1663_v1 = vmul.f32 %v3105_v15, %v3638_v2  ;;  %v3656_v44 = vld [vmem:[%s5711_s0 + $0x228] sm:$0xff] }
  0x3d   :  { %v1530_v19 = vadd.f32 %v1466_v53, %v1334_v52  ;;  %v714_v10 = vmul.f32 %v3520_v61, %v3118_v20  ;;  %v746_v27 = vadd.f32 %v682_v31, %v549_v56  ;;  %v385_v45 = vadd.f32 %v321_v3, %v125_v37 }
  0x3e   :  { %v1169_v35 = vadd.f32 %v1105_v11, %v973_v48  ;;  %v910_v34 = vmul.f32 %v3531_v47, %v3125_v22  ;;  %v1106_v62 = vmul.f32 %v3536_v26, %v3127_v23  ;;  %v1303_v0 = vmul.f32 %v3656_v44, %v3129_v24 }
  0x3f   :  { %v1726_v53 = vadd.f32 %v1662_v63, %v1530_v19  ;;  %v94_v11 = vmul.f32 %v3420_v7, %v3107_v16  ;;  %v942_v43 = vadd.f32 %v878_v29, %v746_v27  ;;  %v581_v36 = vadd.f32 %v517_v42, %v385_v45  ;;  %v3672_v63 = vld [vmem:[%s5711_s0 + $0x22a] sm:$0xff] }
  0x40   :  { %v1366_v9 = vadd.f32 %v1302_v6, %v1169_v35  ;;  %v290_v31 = vmul.f32 %v3427_v28, %v3109_v17  ;;  %v1499_v7 = vmul.f32 %v3667_v51, %v3131_v25  ;;  %v1695_v6 = vmul.f32 %v3105_v15, %v3672_v63  ;;  %v3688_v28 = vld [vmem:[%s5711_s0 + $0x80] sm:$0xff] }
  0x41   :  { %2969 = vmatmul.mubr.msk.f32.gmra.mxu0 %vm1793_vm1, %v1726_v53  ;;  %v486_v54 = vmul.f32 %v3437_v4, %v3111_v18  ;;  %v683_v59 = vmul.f32 %v3552_v30, %v3118_v20  ;;  %v1138_v14 = vadd.f32 %v1074_v5, %v942_v43  ;;  %v778_v52 = vadd.f32 %v714_v10, %v581_v36  ;;  %v3701_v10 = vld [vmem:[%s5711_s0 + $0x81] sm:$0xff] }
  0x42   :  { %v1562_v29 = vadd.f32 %v1498_v39, %v1366_v9  ;;  %v354_v37 = vadd.f32 %v290_v31, %v94_v11  ;;  %v879_v48 = vmul.f32 %v3565_v41, %v3125_v22  ;;  %v1075_v56 = vmul.f32 %v3570_v12, %v3127_v23  ;;  %v3706_v35 = vld [vmem:[%s5711_s0 + $0x82] sm:$0xff]  ;;  %v3722_v9 = vld [vmem:[%s5711_s0 + $0x230] sm:$0xff] }
  0x43   :  { %v1272_v4 = vmul.f32 %v3688_v28, %v3129_v24  ;;  %v126_v39 = vmul.f32 %v3454_v50, %v3107_v16  ;;  %v1335_v3 = vadd.f32 %v1271_v57, %v1138_v14  ;;  %v974_v42 = vadd.f32 %v910_v34, %v778_v52  ;;  %v3742_v52 = vld [vmem:[%s5711_s0 + $0x232] sm:$0xff] }
  0x44   :  { %v1758_v5 = vadd.f32 %v1694_v60, %v1562_v29  ;;  %v550_v19 = vadd.f32 %v486_v54, %v354_v37  ;;  %v1468_v27 = vmul.f32 %v3701_v10, %v3131_v25  ;;  %v1664_v50 = vmul.f32 %v3105_v15, %v3706_v35  ;;  %v3733_v54 = vld [vmem:[%s5711_s0 + $0x231] sm:$0xff] }
  0x45   :  { %v322_v60 = vmul.f32 %v3461_v33, %v3109_v17  ;;  %v518_v57 = vmul.f32 %v3471_v32, %v3111_v18  ;;  %v1531_v45 = vadd.f32 %v1467_v46, %v1335_v3  ;;  %v1170_v34 = vadd.f32 %v1106_v62, %v974_v42 }
  0x46   :  { %3017 = vmatmul.mubr.msk.f32.gmra.mxu1 %vm1793_vm1, %v1758_v5  ;;  %v747_v53 = vadd.f32 %v683_v59, %v550_v19  ;;  %v715_v11 = vmul.f32 %v3586_v13, %v3118_v20  ;;  %v911_v33 = vmul.f32 %v3597_v49, %v3125_v22  ;;  %v1107_v32 = vmul.f32 %v3606_v21, %v3127_v23 }
  0x47   :  { %v386_v43 = vadd.f32 %v322_v60, %v126_v39  ;;  %v1304_v46 = vmul.f32 %v3722_v9, %v3129_v24  ;;  %v1727_v62 = vadd.f32 %v1663_v1, %v1531_v45  ;;  %v1367_v36 = vadd.f32 %v1303_v0, %v1170_v34  ;;  %v3769_v34 = vld [vmem:[%s5711_s0 + $0x91] sm:$0xff] }
  0x48   :  { %v943_v31 = vadd.f32 %v879_v48, %v747_v53  ;;  %v95_v59 = vmul.f32 %v3488_v38, %v3107_v16  ;;  %v1500_v14 = vmul.f32 %v3733_v54, %v3131_v25  ;;  %v291_v1 = vmul.f32 %v3497_v40, %v3109_v17  ;;  %v3774_v53 = vld [vmem:[%s5711_s0 + $0x92] sm:$0xff] }
  0x49   :  { %v582_v29 = vadd.f32 %v518_v57, %v386_v43  ;;  %v487_v0 = vmul.f32 %v3502_v55, %v3111_v18  ;;  %2971 = vmatprep.mubr.msk.f32.mxu0 %vm1793_vm1, %v1727_v62  ;;  %v1563_v37 = vadd.f32 %v1499_v7, %v1367_v36  ;;  %v1696_v38 = vmul.f32 %v3105_v15, %v3742_v52  ;;  %v3760_v55 = vld [vmem:[%s5711_s0 + $0x90] sm:$0xff] }
  0x4a   :  { %v1139_v48 = vadd.f32 %v1075_v56, %v943_v31  ;;  %v684_v39 = vmul.f32 %v3624_v8, %v3118_v20  ;;  %v355_v3 = vadd.f32 %v291_v1, %v95_v59  ;;  %v880_v42 = vmul.f32 %v3633_v58, %v3125_v22 }
  0x4b   :  { %v779_v5 = vadd.f32 %v715_v11, %v582_v29  ;;  %v1076_v40 = vmul.f32 %v3638_v2, %v3127_v23  ;;  %v1759_v7 = vadd.f32 %v1695_v6, %v1563_v37  ;;  %v1273_v19 = vmul.f32 %v3760_v55, %v3129_v24 }
  0x4c   :  { %v1336_v56 = vadd.f32 %v1272_v4, %v1139_v48  ;;  %v127_v60 = vmul.f32 %v3520_v61, %v3107_v16  ;;  %v551_v45 = vadd.f32 %v487_v0, %v355_v3  ;;  %v323_v6 = vmul.f32 %v3531_v47, %v3109_v17  ;;  %v3803_v48 = vld [vmem:[%s5711_s0 + $0x241] sm:$0xff] }
  0x4d   :  { %v975_v57 = vadd.f32 %v911_v33, %v779_v5  ;;  %v519_v4 = vmul.f32 %v3536_v26, %v3111_v18  ;;  %3019 = vmatprep.mubr.msk.f32.mxu1 %vm1793_vm1, %v1759_v7  ;;  %v1469_v11 = vmul.f32 %v3769_v34, %v3131_v25  ;;  %v1665_v43 = vmul.f32 %v3105_v15, %v3774_v53  ;;  %v3792_v26 = vld [vmem:[%s5711_s0 + $0x240] sm:$0xff] }
  0x4e   :  { %v1532_v61 = vadd.f32 %v1468_v27, %v1336_v56  ;;  %v716_v33 = vmul.f32 %v3656_v44, %v3118_v20  ;;  %v748_v36 = vadd.f32 %v684_v39, %v551_v45  ;;  %v387_v31 = vadd.f32 %v323_v6, %v127_v60 }
  0x4f   :  { %v1171_v62 = vadd.f32 %v1107_v32, %v975_v57  ;;  %v912_v47 = vmul.f32 %v3667_v51, %v3125_v22  ;;  %v1108_v59 = vmul.f32 %v3672_v63, %v3127_v23  ;;  %v1305_v29 = vmul.f32 %v3792_v26, %v3129_v24 }
  0x50   :  { %v1728_v27 = vadd.f32 %v1664_v50, %v1532_v61  ;;  %v96_v32 = vmul.f32 %v3552_v30, %v3107_v16  ;;  %v944_v0 = vadd.f32 %v880_v42, %v748_v36  ;;  %v583_v37 = vadd.f32 %v519_v4, %v387_v31  ;;  %v3808_v50 = vld [vmem:[%s5711_s0 + $0x242] sm:$0xff] }
  0x51   :  { %v1368_v1 = vadd.f32 %v1304_v46, %v1171_v62  ;;  %v292_v39 = vmul.f32 %v3565_v41, %v3109_v17  ;;  %v1501_v30 = vmul.f32 %v3803_v48, %v3131_v25  ;;  %v1697_v46 = vmul.f32 %v3105_v15, %v3808_v50  ;;  %v3824_v41 = vld [vmem:[%s5711_s0 + $0x98] sm:$0xff] }
  0x52   :  { %2972 = vmatmul.mubr.msk.f32.gmra.mxu0 %vm1793_vm1, %v1728_v27  ;;  %v488_v5 = vmul.f32 %v3570_v12, %v3111_v18  ;;  %v685_v3 = vmul.f32 %v3688_v28, %v3118_v20  ;;  %v1140_v7 = vadd.f32 %v1076_v40, %v944_v0  ;;  %v780_v56 = vadd.f32 %v716_v33, %v583_v37  ;;  %v3837_v33 = vld [vmem:[%s5711_s0 + $0x99] sm:$0xff] }
  0x53   :  { %v1564_v42 = vadd.f32 %v1500_v14, %v1368_v1  ;;  %v356_v60 = vadd.f32 %v292_v39, %v96_v32  ;;  %v881_v57 = vmul.f32 %v3701_v10, %v3125_v22  ;;  %v1077_v45 = vmul.f32 %v3706_v35, %v3127_v23  ;;  %v3842_v62 = vld [vmem:[%s5711_s0 + $0x9a] sm:$0xff]  ;;  %v3858_v1 = vld [vmem:[%s5711_s0 + $0x248] sm:$0xff] }
  0x54   :  { %v1274_v12 = vmul.f32 %v3824_v41, %v3129_v24  ;;  %v128_v14 = vmul.f32 %v3586_v13, %v3107_v16  ;;  %v1337_v6 = vadd.f32 %v1273_v19, %v1140_v7  ;;  %v976_v4 = vadd.f32 %v912_v47, %v780_v56  ;;  %v3878_v56 = vld [vmem:[%s5711_s0 + $0x24a] sm:$0xff] }
  0x55   :  { %v1760_v40 = vadd.f32 %v1696_v38, %v1564_v42  ;;  %v552_v61 = vadd.f32 %v488_v5, %v356_v60  ;;  %v1470_v36 = vmul.f32 %v3837_v33, %v3131_v25  ;;  %v1666_v13 = vmul.f32 %v3105_v15, %v3842_v62  ;;  %v3869_v5 = vld [vmem:[%s5711_s0 + $0x249] sm:$0xff] }
  0x56   :  { %v324_v38 = vmul.f32 %v3597_v49, %v3109_v17  ;;  %v520_v19 = vmul.f32 %v3606_v21, %v3111_v18  ;;  %v1533_v31 = vadd.f32 %v1469_v11, %v1337_v6  ;;  %v1172_v47 = vadd.f32 %v1108_v59, %v976_v4 }
  0x57   :  { %3020 = vmatmul.mubr.msk.f32.gmra.mxu1 %vm1793_vm1, %v1760_v40  ;;  %v749_v27 = vadd.f32 %v685_v3, %v552_v61  ;;  %v717_v32 = vmul.f32 %v3722_v9, %v3118_v20  ;;  %v913_v49 = vmul.f32 %v3733_v54, %v3125_v22  ;;  %v1109_v21 = vmul.f32 %v3742_v52, %v3127_v23 }
  0x58   :  { %v388_v0 = vadd.f32 %v324_v38, %v128_v14  ;;  %v1306_v11 = vmul.f32 %v3858_v1, %v3129_v24  ;;  %v1729_v59 = vadd.f32 %v1665_v43, %v1533_v31  ;;  %v1369_v37 = vadd.f32 %v1305_v29, %v1172_v47  ;;  %v3905_v47 = vld [vmem:[%s5711_s0 + $0xa9] sm:$0xff] }
  0x59   :  { %v945_v39 = vadd.f32 %v881_v57, %v749_v27  ;;  %v97_v3 = vmul.f32 %v3624_v8, %v3107_v16  ;;  %v1502_v7 = vmul.f32 %v3869_v5, %v3131_v25  ;;  %v293_v43 = vmul.f32 %v3633_v58, %v3109_v17  ;;  %v3910_v27 = vld [vmem:[%s5711_s0 + $0xaa] sm:$0xff] }
  0x5a   :  { %v584_v42 = vadd.f32 %v520_v19, %v388_v0  ;;  %v489_v29 = vmul.f32 %v3638_v2, %v3111_v18  ;;  %2974 = vmatprep.mubr.msk.f32.mxu0 %vm1793_vm1, %v1729_v59  ;;  %v1565_v60 = vadd.f32 %v1501_v30, %v1369_v37  ;;  %v1698_v8 = vmul.f32 %v3105_v15, %v3878_v56  ;;  %v3896_v2 = vld [vmem:[%s5711_s0 + $0xa8] sm:$0xff] }
  0x5b   :  { %v1141_v57 = vadd.f32 %v1077_v45, %v945_v39  ;;  %v686_v14 = vmul.f32 %v3760_v55, %v3118_v20  ;;  %v357_v6 = vadd.f32 %v293_v43, %v97_v3  ;;  %v882_v4 = vmul.f32 %v3769_v34, %v3125_v22 }
  0x5c   :  { %v781_v40 = vadd.f32 %v717_v32, %v584_v42  ;;  %v1078_v58 = vmul.f32 %v3774_v53, %v3127_v23  ;;  %v1761_v30 = vadd.f32 %v1697_v46, %v1565_v60  ;;  %v1275_v61 = vmul.f32 %v3896_v2, %v3129_v24 }
  0x5d   :  { %v1338_v45 = vadd.f32 %v1274_v12, %v1141_v57  ;;  %v129_v38 = vmul.f32 %v3656_v44, %v3107_v16  ;;  %v553_v31 = vadd.f32 %v489_v29, %v357_v6  ;;  %v325_v46 = vmul.f32 %v3667_v51, %v3109_v17  ;;  %v3939_v57 = vld [vmem:[%s5711_s0 + $0x259] sm:$0xff] }
  0x5e   :  { %v977_v19 = vadd.f32 %v913_v49, %v781_v40  ;;  %v521_v12 = vmul.f32 %v3672_v63, %v3111_v18  ;;  %3022 = vmatprep.mubr.msk.f32.mxu1 %vm1793_vm1, %v1761_v30  ;;  %v1471_v32 = vmul.f32 %v3905_v47, %v3131_v25  ;;  %v1667_v0 = vmul.f32 %v3105_v15, %v3910_v27  ;;  %v3928_v63 = vld [vmem:[%s5711_s0 + $0x258] sm:$0xff] }
  0x5f   :  { %v1534_v44 = vadd.f32 %v1470_v36, %v1338_v45  ;;  %v718_v49 = vmul.f32 %v3792_v26, %v3118_v20  ;;  %v750_v37 = vadd.f32 %v686_v14, %v553_v31  ;;  %v389_v39 = vadd.f32 %v325_v46, %v129_v38 }
  0x60   :  { %v1173_v59 = vadd.f32 %v1109_v21, %v977_v19  ;;  %v914_v51 = vmul.f32 %v3803_v48, %v3125_v22  ;;  %v1110_v3 = vmul.f32 %v3808_v50, %v3127_v23  ;;  %v1307_v42 = vmul.f32 %v3928_v63, %v3129_v24 }
  0x61   :  { %v1730_v36 = vadd.f32 %v1666_v13, %v1534_v44  ;;  %v98_v21 = vmul.f32 %v3688_v28, %v3107_v16  ;;  %v946_v29 = vadd.f32 %v882_v4, %v750_v37  ;;  %v585_v60 = vadd.f32 %v521_v12, %v389_v39  ;;  %v3944_v13 = vld [vmem:[%s5711_s0 + $0x25a] sm:$0xff] }
  0x62   :  { %v1370_v43 = vadd.f32 %v1306_v11, %v1173_v59  ;;  %v294_v14 = vmul.f32 %v3701_v10, %v3109_v17  ;;  %v1503_v28 = vmul.f32 %v3939_v57, %v3131_v25  ;;  %v1699_v11 = vmul.f32 %v3105_v15, %v3944_v13  ;;  %v3960_v10 = vld [vmem:[%s5711_s0 + $0xb0] sm:$0xff] }
  0x63   :  { %2975 = vmatmul.mubr.msk.f32.gmra.mxu0 %vm1793_vm1, %v1730_v36  ;;  %v490_v40 = vmul.f32 %v3706_v35, %v3111_v18  ;;  %v687_v6 = vmul.f32 %v3824_v41, %v3118_v20  ;;  %v1142_v30 = vadd.f32 %v1078_v58, %v946_v29  ;;  %v782_v45 = vadd.f32 %v718_v49, %v585_v60  ;;  %v3973_v49 = vld [vmem:[%s5711_s0 + $0xb1] sm:$0xff] }
  0x64   :  { %v1566_v4 = vadd.f32 %v1502_v7, %v1370_v43  ;;  %v358_v38 = vadd.f32 %v294_v14, %v98_v21  ;;  %v883_v19 = vmul.f32 %v3837_v33, %v3125_v22  ;;  %v1079_v31 = vmul.f32 %v3842_v62, %v3127_v23  ;;  %v3978_v59 = vld [vmem:[%s5711_s0 + $0xb2] sm:$0xff]  ;;  %v3994_v43 = vld [vmem:[%s5711_s0 + $0x260] sm:$0xff] }
  0x65   :  { %v1276_v35 = vmul.f32 %v3960_v10, %v3129_v24  ;;  %v130_v7 = vmul.f32 %v3722_v9, %v3107_v16  ;;  %v1339_v46 = vadd.f32 %v1275_v61, %v1142_v30  ;;  %v978_v12 = vadd.f32 %v914_v51, %v782_v45  ;;  %v4005_v14 = vld [vmem:[%s5711_s0 + $0x261] sm:$0xff] }
  0x66   :  { %v1762_v58 = vadd.f32 %v1698_v8, %v1566_v4  ;;  %v554_v44 = vadd.f32 %v490_v40, %v358_v38  ;;  %v1472_v37 = vmul.f32 %v3973_v49, %v3131_v25  ;;  %v1668_v9 = vmul.f32 %v3105_v15, %v3978_v59  ;;  %v4014_v30 = vld [vmem:[%s5711_s0 + $0x262] sm:$0xff] }
  0x67   :  { %v326_v8 = vmul.f32 %v3733_v54, %v3109_v17  ;;  %v522_v61 = vmul.f32 %v3742_v52, %v3111_v18  ;;  %v1535_v39 = vadd.f32 %v1471_v32, %v1339_v46  ;;  %v1174_v51 = vadd.f32 %v1110_v3, %v978_v12 }
  0x68   :  { %3023 = vmatmul.mubr.msk.f32.gmra.mxu1 %vm1793_vm1, %v1762_v58  ;;  %v751_v36 = vadd.f32 %v687_v6, %v554_v44  ;;  %v719_v21 = vmul.f32 %v3858_v1, %v3118_v20  ;;  %v915_v54 = vmul.f32 %v3869_v5, %v3125_v22  ;;  %v1111_v52 = vmul.f32 %v3878_v56, %v3127_v23 }
  0x69   :  { %v390_v15 = vadd.f32 %v326_v8, %v130_v7  ;;  %v1308_v32 = vmul.f32 %v3994_v43, %v3129_v24  ;;  %v1731_v3 = vadd.f32 %v1667_v0, %v1535_v39  ;;  %v1371_v29 = vadd.f32 %v1307_v42, %v1174_v51  ;;  %v4046_v51 = vld [vmem:[%s5711_s0 + $0xc1] sm:$0xff] }
  0x6a   :  { %v947_v60 = vadd.f32 %v883_v19, %v751_v36  ;;  %v99_v40 = vmul.f32 %v3760_v55, %v3107_v16  ;;  %v1504_v4 = vmul.f32 %v4005_v14, %v3131_v25  ;;  %v295_v0 = vmul.f32 %v3769_v34, %v3109_v17  ;;  %v4024_v55 = vld [vmem:[%s5710_s1 + $0x8] ss:$0 sm:$0xff] }
  0x6b   :  { %v586_v6 = vadd.f32 %v522_v61, %v390_v15  ;;  %v491_v42 = vmul.f32 %v3774_v53, %v3111_v18  ;;  %2977 = vmatprep.mubr.msk.f32.mxu0 %vm1793_vm1, %v1731_v3  ;;  %v1567_v45 = vadd.f32 %v1503_v28, %v1371_v29  ;;  %v1700_v19 = vmul.f32 %v4024_v55, %v4014_v30  ;;  %v4051_v36 = vld [vmem:[%s5711_s0 + $0xc2] sm:$0xff] }
  0x6c   :  { %v1143_v38 = vadd.f32 %v1079_v31, %v947_v60  ;;  %v688_v7 = vmul.f32 %v3896_v2, %v3118_v20  ;;  %v359_v34 = vadd.f32 %v295_v0, %v99_v40  ;;  %v884_v53 = vmul.f32 %v3905_v47, %v3125_v22  ;;  %v4037_v31 = vld [vmem:[%s5711_s0 + $0xc0] sm:$0xff] }
  0x6d   :  { %v783_v58 = vadd.f32 %v719_v21, %v586_v6  ;;  %v1080_v28 = vmul.f32 %v3910_v27, %v3127_v23  ;;  %v1763_v46 = vadd.f32 %v1699_v11, %v1567_v45  ;;  %v1277_v44 = vmul.f32 %v4037_v31, %v3129_v24 }
  0x6e   :  { %v1340_v12 = vadd.f32 %v1276_v35, %v1143_v38  ;;  %v131_v8 = vmul.f32 %v3792_v26, %v3107_v16  ;;  %v555_v39 = vadd.f32 %v491_v42, %v359_v34  ;;  %v327_v11 = vmul.f32 %v3803_v48, %v3109_v17  ;;  %v4080_v38 = vld [vmem:[%s5711_s0 + $0x271] sm:$0xff] }
  0x6f   :  { %v979_v61 = vadd.f32 %v915_v54, %v783_v58  ;;  %v523_v35 = vmul.f32 %v3808_v50, %v3111_v18  ;;  %3025 = vmatprep.mubr.msk.f32.mxu1 %vm1793_vm1, %v1763_v46  ;;  %v1473_v21 = vmul.f32 %v4046_v51, %v3131_v25  ;;  %v1669_v15 = vmul.f32 %v4024_v55, %v4051_v36  ;;  %v4069_v50 = vld [vmem:[%s5711_s0 + $0x270] sm:$0xff] }
  0x70   :  { %v1536_v26 = vadd.f32 %v1472_v37, %v1340_v12  ;;  %v720_v54 = vmul.f32 %v3928_v63, %v3118_v20  ;;  %v752_v29 = vadd.f32 %v688_v7, %v555_v39  ;;  %v391_v60 = vadd.f32 %v327_v11, %v131_v8 }
  0x71   :  { %v1175_v3 = vadd.f32 %v1111_v52, %v979_v61  ;;  %v916_v48 = vmul.f32 %v3939_v57, %v3125_v22  ;;  %v1112_v40 = vmul.f32 %v3944_v13, %v3127_v23  ;;  %v1309_v6 = vmul.f32 %v4069_v50, %v3129_v24 }
  0x72   :  { %v1732_v37 = vadd.f32 %v1668_v9, %v1536_v26  ;;  %v100_v52 = vmul.f32 %v3824_v41, %v3107_v16  ;;  %v948_v42 = vadd.f32 %v884_v53, %v752_v29  ;;  %v587_v45 = vadd.f32 %v523_v35, %v391_v60  ;;  %v4085_v9 = vld [vmem:[%s5711_s0 + $0x272] sm:$0xff] }
  0x73   :  { %v1372_v0 = vadd.f32 %v1308_v32, %v1175_v3  ;;  %v296_v7 = vmul.f32 %v3837_v33, %v3109_v17  ;;  %v1505_v41 = vmul.f32 %v4080_v38, %v3131_v25  ;;  %v1701_v32 = vmul.f32 %v4024_v55, %v4085_v9  ;;  %v4101_v33 = vld [vmem:[%s5711_s0 + $0xc8] sm:$0xff] }
  0x74   :  { %2978 = vmatmul.mubr.msk.f32.gmra.mxu0 %vm1793_vm1, %v1732_v37  ;;  %v492_v58 = vmul.f32 %v3842_v62, %v3111_v18  ;;  %v689_v34 = vmul.f32 %v3960_v10, %v3118_v20  ;;  %v1144_v46 = vadd.f32 %v1080_v28, %v948_v42  ;;  %v784_v12 = vadd.f32 %v720_v54, %v587_v45  ;;  %v4114_v54 = vld [vmem:[%s5711_s0 + $0xc9] sm:$0xff] }
  0x75   :  { %v1568_v53 = vadd.f32 %v1504_v4, %v1372_v0  ;;  %v360_v8 = vadd.f32 %v296_v7, %v100_v52  ;;  %v885_v61 = vmul.f32 %v3973_v49, %v3125_v22  ;;  %v1081_v39 = vmul.f32 %v3978_v59, %v3127_v23  ;;  %v4119_v3 = vld [vmem:[%s5711_s0 + $0xca] sm:$0xff]  ;;  %v4135_v0 = vld [vmem:[%s5711_s0 + $0x278] sm:$0xff] }
  0x76   :  { %v1278_v62 = vmul.f32 %v4101_v33, %v3129_v24  ;;  %v132_v4 = vmul.f32 %v3858_v1, %v3107_v16  ;;  %v1341_v11 = vadd.f32 %v1277_v44, %v1144_v46  ;;  %v980_v35 = vadd.f32 %v916_v48, %v784_v12  ;;  %v4155_v12 = vld [vmem:[%s5711_s0 + $0x27a] sm:$0xff] }
  0x77   :  { %v1764_v28 = vadd.f32 %v1700_v19, %v1568_v53  ;;  %v556_v26 = vadd.f32 %v492_v58, %v360_v8  ;;  %v1474_v29 = vmul.f32 %v4114_v54, %v3131_v25  ;;  %v1670_v1 = vmul.f32 %v4024_v55, %v4119_v3  ;;  %v4146_v58 = vld [vmem:[%s5711_s0 + $0x279] sm:$0xff] }
  0x78   :  { %v328_v19 = vmul.f32 %v3869_v5, %v3109_v17  ;;  %v524_v44 = vmul.f32 %v3878_v56, %v3111_v18  ;;  %v1537_v60 = vadd.f32 %v1473_v21, %v1341_v11  ;;  %v1176_v48 = vadd.f32 %v1112_v40, %v980_v35 }
  0x79   :  { %3026 = vmatmul.mubr.msk.f32.gmra.mxu1 %vm1793_vm1, %v1764_v28  ;;  %v753_v37 = vadd.f32 %v689_v34, %v556_v26  ;;  %v721_v52 = vmul.f32 %v3994_v43, %v3118_v20  ;;  %v917_v5 = vmul.f32 %v4005_v14, %v3125_v22  ;;  %v1113_v56 = vmul.f32 %v4014_v30, %v3127_v23 }
  0x7a   :  { %v392_v42 = vadd.f32 %v328_v19, %v132_v4  ;;  %v1310_v21 = vmul.f32 %v4135_v0, %v3129_v24  ;;  %v1733_v40 = vadd.f32 %v1669_v15, %v1537_v60  ;;  %v1373_v45 = vadd.f32 %v1309_v6, %v1176_v48  ;;  %v4182_v48 = vld [vmem:[%s5711_s0 + $0xd9] sm:$0xff] }
  0x7b   :  { %v949_v7 = vadd.f32 %v885_v61, %v753_v37  ;;  %v101_v34 = vmul.f32 %v3896_v2, %v3107_v16  ;;  %v1506_v46 = vmul.f32 %v4146_v58, %v3131_v25  ;;  %v297_v15 = vmul.f32 %v3905_v47, %v3109_v17  ;;  %v4187_v37 = vld [vmem:[%s5711_s0 + $0xda] sm:$0xff] }
  0x7c   :  { %v588_v53 = vadd.f32 %v524_v44, %v392_v42  ;;  %v493_v6 = vmul.f32 %v3910_v27, %v3111_v18  ;;  %2980 = vmatprep.mubr.msk.f32.mxu0 %vm1793_vm1, %v1733_v40  ;;  %v1569_v8 = vadd.f32 %v1505_v41, %v1373_v45  ;;  %v1702_v2 = vmul.f32 %v4024_v55, %v4155_v12  ;;  %v4173_v27 = vld [vmem:[%s5711_s0 + $0xd8] sm:$0xff] }
  0x7d   :  { %v1145_v61 = vadd.f32 %v1081_v39, %v949_v7  ;;  %v690_v4 = vmul.f32 %v4037_v31, %v3118_v20  ;;  %v361_v11 = vadd.f32 %v297_v15, %v101_v34  ;;  %v886_v35 = vmul.f32 %v4046_v51, %v3125_v22 }
  0x7e   :  { %v785_v28 = vadd.f32 %v721_v52, %v588_v53  ;;  %v1082_v47 = vmul.f32 %v4051_v36, %v3127_v23  ;;  %v1765_v41 = vadd.f32 %v1701_v32, %v1569_v8  ;;  %v1279_v26 = vmul.f32 %v4173_v27, %v3129_v24 }
  0x7f   :  { %v1342_v39 = vadd.f32 %v1278_v62, %v1145_v61  ;;  %v133_v19 = vmul.f32 %v3928_v63, %v3107_v16  ;;  %v557_v60 = vadd.f32 %v493_v6, %v361_v11  ;;  %v329_v32 = vmul.f32 %v3939_v57, %v3109_v17  ;;  %v4216_v61 = vld [vmem:[%s5711_s0 + $0x289] sm:$0xff] }
  0x80   :  { %v981_v44 = vadd.f32 %v917_v5, %v785_v28  ;;  %v525_v62 = vmul.f32 %v3944_v13, %v3111_v18  ;;  %3028 = vmatprep.mubr.msk.f32.mxu1 %vm1793_vm1, %v1765_v41  ;;  %v1475_v52 = vmul.f32 %v4182_v48, %v3131_v25  ;;  %v1671_v42 = vmul.f32 %v4024_v55, %v4187_v37  ;;  %v4205_v13 = vld [vmem:[%s5711_s0 + $0x288] sm:$0xff] }
  0x81   :  { %v1538_v63 = vadd.f32 %v1474_v29, %v1342_v39  ;;  %v722_v5 = vmul.f32 %v4069_v50, %v3118_v20  ;;  %v754_v45 = vadd.f32 %v690_v4, %v557_v60  ;;  %v393_v7 = vadd.f32 %v329_v32, %v133_v19 }
  0x82   :  { %v1177_v40 = vadd.f32 %v1113_v56, %v981_v44  ;;  %v918_v57 = vmul.f32 %v4080_v38, %v3125_v22  ;;  %v1114_v34 = vmul.f32 %v4085_v9, %v3127_v23  ;;  %v1311_v53 = vmul.f32 %v4205_v13, %v3129_v24 }
  0x83   :  { %v1734_v29 = vadd.f32 %v1670_v1, %v1538_v63  ;;  %v102_v56 = vmul.f32 %v3960_v10, %v3107_v16  ;;  %v950_v6 = vadd.f32 %v886_v35, %v754_v45  ;;  %v589_v8 = vadd.f32 %v525_v62, %v393_v7  ;;  %v4221_v1 = vld [vmem:[%s5711_s0 + $0x28a] sm:$0xff] }
  0x84   :  { %v1374_v15 = vadd.f32 %v1310_v21, %v1177_v40  ;;  %v298_v4 = vmul.f32 %v3973_v49, %v3109_v17  ;;  %v1507_v10 = vmul.f32 %v4216_v61, %v3131_v25  ;;  %v1703_v21 = vmul.f32 %v4024_v55, %v4221_v1  ;;  %v4237_v49 = vld [vmem:[%s5711_s0 + $0xe0] sm:$0xff] }
  0x85   :  { %2981 = vmatmul.mubr.msk.f32.gmra.mxu0 %vm1793_vm1, %v1734_v29  ;;  %v494_v28 = vmul.f32 %v3978_v59, %v3111_v18  ;;  %v691_v11 = vmul.f32 %v4101_v33, %v3118_v20  ;;  %v1146_v41 = vadd.f32 %v1082_v47, %v950_v6  ;;  %v786_v39 = vadd.f32 %v722_v5, %v589_v8  ;;  %v4250_v5 = vld [vmem:[%s5711_s0 + $0xe1] sm:$0xff] }
  0x86   :  { %v1570_v35 = vadd.f32 %v1506_v46, %v1374_v15  ;;  %v362_v19 = vadd.f32 %v298_v4, %v102_v56  ;;  %v887_v44 = vmul.f32 %v4114_v54, %v3125_v22  ;;  %v1083_v60 = vmul.f32 %v4119_v3, %v3127_v23  ;;  %v4255_v40 = vld [vmem:[%s5711_s0 + $0xe2] sm:$0xff]  ;;  %v4271_v15 = vld [vmem:[%s5711_s0 + $0x290] sm:$0xff] }
  0x87   :  { %v1280_v59 = vmul.f32 %v4237_v49, %v3129_v24  ;;  %v134_v46 = vmul.f32 %v3994_v43, %v3107_v16  ;;  %v1343_v32 = vadd.f32 %v1279_v26, %v1146_v41  ;;  %v982_v62 = vadd.f32 %v918_v57, %v786_v39  ;;  %v4291_v39 = vld [vmem:[%s5711_s0 + $0x292] sm:$0xff] }
  0x88   :  { %v1766_v47 = vadd.f32 %v1702_v2, %v1570_v35  ;;  %v558_v63 = vadd.f32 %v494_v28, %v362_v19  ;;  %v1476_v45 = vmul.f32 %v4250_v5, %v3131_v25  ;;  %v1672_v43 = vmul.f32 %v4024_v55, %v4255_v40  ;;  %v4282_v28 = vld [vmem:[%s5711_s0 + $0x291] sm:$0xff] }
  0x89   :  { %v330_v2 = vmul.f32 %v4005_v14, %v3109_v17  ;;  %v526_v26 = vmul.f32 %v4014_v30, %v3111_v18  ;;  %v1539_v7 = vadd.f32 %v1475_v52, %v1343_v32  ;;  %v1178_v57 = vadd.f32 %v1114_v34, %v982_v62 }
  0x8a   :  { %3029 = vmatmul.mubr.msk.f32.gmra.mxu1 %vm1793_vm1, %v1766_v47  ;;  %v755_v29 = vadd.f32 %v691_v11, %v558_v63  ;;  %v723_v56 = vmul.f32 %v4135_v0, %v3118_v20  ;;  %v919_v14 = vmul.f32 %v4146_v58, %v3125_v22  ;;  %v1115_v30 = vmul.f32 %v4155_v12, %v3127_v23 }
  0x8b   :  { %v394_v6 = vadd.f32 %v330_v2, %v134_v46  ;;  %v1312_v52 = vmul.f32 %v4271_v15, %v3129_v24  ;;  %v1735_v34 = vadd.f32 %v1671_v42, %v1539_v7  ;;  %v1375_v8 = vadd.f32 %v1311_v53, %v1178_v57  ;;  %v4318_v57 = vld [vmem:[%s5711_s0 + $0xf1] sm:$0xff] }
  0x8c   :  { %v951_v4 = vadd.f32 %v887_v44, %v755_v29  ;;  %v103_v11 = vmul.f32 %v4037_v31, %v3107_v16  ;;  %v1508_v41 = vmul.f32 %v4282_v28, %v3131_v25  ;;  %v299_v42 = vmul.f32 %v4046_v51, %v3109_v17  ;;  %v4323_v29 = vld [vmem:[%s5711_s0 + $0xf2] sm:$0xff] }
  0x8d   :  { %v590_v35 = vadd.f32 %v526_v26, %v394_v6  ;;  %v495_v53 = vmul.f32 %v4051_v36, %v3111_v18  ;;  %2983 = vmatprep.mubr.msk.f32.mxu0 %vm1793_vm1, %v1735_v34  ;;  %v1571_v19 = vadd.f32 %v1507_v10, %v1375_v8  ;;  %v1704_v31 = vmul.f32 %v4024_v55, %v4291_v39  ;;  %v4309_v36 = vld [vmem:[%s5711_s0 + $0xf0] sm:$0xff] }
  0x8e   :  { %v1147_v44 = vadd.f32 %v1083_v60, %v951_v4  ;;  %v692_v46 = vmul.f32 %v4173_v27, %v3118_v20  ;;  %v363_v32 = vadd.f32 %v299_v42, %v103_v11  ;;  %v888_v62 = vmul.f32 %v4182_v48, %v3125_v22 }
  0x8f   :  { %v787_v47 = vadd.f32 %v723_v56, %v590_v35  ;;  %v1084_v51 = vmul.f32 %v4187_v37, %v3127_v23  ;;  %v1767_v10 = vadd.f32 %v1703_v21, %v1571_v19  ;;  %v1281_v63 = vmul.f32 %v4309_v36, %v3129_v24 }
  0x90   :  { %v1344_v60 = vadd.f32 %v1280_v59, %v1147_v44  ;;  %v135_v2 = vmul.f32 %v4069_v50, %v3107_v16  ;;  %v559_v7 = vadd.f32 %v495_v53, %v363_v32  ;;  %v331_v21 = vmul.f32 %v4080_v38, %v3109_v17  ;;  %v4352_v44 = vld [vmem:[%s5711_s0 + $0x2a1] sm:$0xff] }
  0x91   :  { %v983_v26 = vadd.f32 %v919_v14, %v787_v47  ;;  %v527_v59 = vmul.f32 %v4085_v9, %v3111_v18  ;;  %3031 = vmatprep.mubr.msk.f32.mxu1 %vm1793_vm1, %v1767_v10  ;;  %v1477_v56 = vmul.f32 %v4318_v57, %v3131_v25  ;;  %v1673_v6 = vmul.f32 %v4024_v55, %v4323_v29  ;;  %v4341_v9 = vld [vmem:[%s5711_s0 + $0x2a0] sm:$0xff] }
  0x92   :  { %v1540_v50 = vadd.f32 %v1476_v45, %v1344_v60  ;;  %v724_v14 = vmul.f32 %v4205_v13, %v3118_v20  ;;  %v756_v8 = vadd.f32 %v692_v46, %v559_v7  ;;  %v395_v4 = vadd.f32 %v331_v21, %v135_v2 }
  0x93   :  { %v1179_v34 = vadd.f32 %v1115_v30, %v983_v26  ;;  %v920_v38 = vmul.f32 %v4216_v61, %v3125_v22  ;;  %v1116_v11 = vmul.f32 %v4221_v1, %v3127_v23  ;;  %v1313_v35 = vmul.f32 %v4341_v9, %v3129_v24 }
  0x94   :  { %v1736_v45 = vadd.f32 %v1672_v43, %v1540_v50  ;;  %v104_v30 = vmul.f32 %v4101_v33, %v3107_v16  ;;  %v952_v53 = vadd.f32 %v888_v62, %v756_v8  ;;  %v591_v19 = vadd.f32 %v527_v59, %v395_v4  ;;  %v4357_v43 = vld [vmem:[%s5711_s0 + $0x2a2] sm:$0xff] }
  0x95   :  { %v1376_v42 = vadd.f32 %v1312_v52, %v1179_v34  ;;  %v300_v46 = vmul.f32 %v4114_v54, %v3109_v17  ;;  %v1509_v33 = vmul.f32 %v4352_v44, %v3131_v25  ;;  %v1705_v52 = vmul.f32 %v4024_v55, %v4357_v43  ;;  %v4373_v54 = vld [vmem:[%s5711_s0 + $0xf8] sm:$0xff] }
  0x96   :  { %2984 = vmatmul.mubr.msk.f32.gmra.mxu0 %vm1793_vm1, %v1736_v45  ;;  %v496_v47 = vmul.f32 %v4119_v3, %v3111_v18  ;;  %v693_v32 = vmul.f32 %v4237_v49, %v3118_v20  ;;  %v1148_v10 = vadd.f32 %v1084_v51, %v952_v53  ;;  %v788_v60 = vadd.f32 %v724_v14, %v591_v19  ;;  %v4386_v14 = vld [vmem:[%s5711_s0 + $0xf9] sm:$0xff] }
  0x97   :  { %v1572_v62 = vadd.f32 %v1508_v41, %v1376_v42  ;;  %v364_v2 = vadd.f32 %v300_v46, %v104_v30  ;;  %v889_v26 = vmul.f32 %v4250_v5, %v3125_v22  ;;  %v1085_v7 = vmul.f32 %v4255_v40, %v3127_v23  ;;  %v4391_v34 = vld [vmem:[%s5711_s0 + $0xfa] sm:$0xff]  ;;  %v4407_v42 = vld [vmem:[%s5711_s0 + $0x2a8] sm:$0xff] }
  0x98   :  { %v1282_v3 = vmul.f32 %v4373_v54, %v3129_v24  ;;  %v136_v41 = vmul.f32 %v4135_v0, %v3107_v16  ;;  %v1345_v21 = vadd.f32 %v1281_v63, %v1148_v10  ;;  %v984_v59 = vadd.f32 %v920_v38, %v788_v60  ;;  %v4427_v60 = vld [vmem:[%s5711_s0 + $0x2aa] sm:$0xff] }
  0x99   :  { %v1768_v51 = vadd.f32 %v1704_v31, %v1572_v62  ;;  %v560_v50 = vadd.f32 %v496_v47, %v364_v2  ;;  %v1478_v8 = vmul.f32 %v4386_v14, %v3131_v25  ;;  %v1674_v0 = vmul.f32 %v4024_v55, %v4391_v34  ;;  %v4418_v47 = vld [vmem:[%s5711_s0 + $0x2a9] sm:$0xff] }
  0x9a   :  { %v332_v31 = vmul.f32 %v4146_v58, %v3109_v17  ;;  %v528_v63 = vmul.f32 %v4155_v12, %v3111_v18  ;;  %v1541_v4 = vadd.f32 %v1477_v56, %v1345_v21  ;;  %v1180_v38 = vadd.f32 %v1116_v11, %v984_v59 }
  0x9b   :  { %3032 = vmatmul.mubr.msk.f32.gmra.mxu1 %vm1793_vm1, %v1768_v51  ;;  %v757_v45 = vadd.f32 %v693_v32, %v560_v50  ;;  %v725_v30 = vmul.f32 %v4271_v15, %v3118_v20  ;;  %v921_v58 = vmul.f32 %v4282_v28, %v3125_v22  ;;  %v1117_v12 = vmul.f32 %v4291_v39, %v3127_v23 }
  0x9c   :  { %v396_v53 = vadd.f32 %v332_v31, %v136_v41  ;;  %v1314_v56 = vmul.f32 %v4407_v42, %v3129_v24  ;;  %v1737_v11 = vadd.f32 %v1673_v6, %v1541_v4  ;;  %v1377_v19 = vadd.f32 %v1313_v35, %v1180_v38  ;;  %v4454_v38 = vld [vmem:[%s5711_s0 + $0x109] sm:$0xff] }
  0x9d   :  { %v953_v46 = vadd.f32 %v889_v26, %v757_v45  ;;  %v105_v32 = vmul.f32 %v4173_v27, %v3107_v16  ;;  %v1510_v10 = vmul.f32 %v4418_v47, %v3131_v25  ;;  %v301_v6 = vmul.f32 %v4182_v48, %v3109_v17  ;;  %v4459_v45 = vld [vmem:[%s5711_s0 + $0x10a] sm:$0xff] }
  0x9e   :  { %v592_v62 = vadd.f32 %v528_v63, %v396_v53  ;;  %v497_v35 = vmul.f32 %v4187_v37, %v3111_v18  ;;  %2986 = vmatprep.mubr.msk.f32.mxu0 %vm1793_vm1, %v1737_v11  ;;  %v1573_v2 = vadd.f32 %v1509_v33, %v1377_v19  ;;  %v1706_v27 = vmul.f32 %v4024_v55, %v4427_v60  ;;  %v4445_v37 = vld [vmem:[%s5711_s0 + $0x108] sm:$0xff] }
  0x9f   :  { %v1149_v26 = vadd.f32 %v1085_v7, %v953_v46  ;;  %v694_v41 = vmul.f32 %v4309_v36, %v3118_v20  ;;  %v365_v21 = vadd.f32 %v301_v6, %v105_v32  ;;  %v890_v59 = vmul.f32 %v4318_v57, %v3125_v22 }
  0xa0   :  { %v789_v51 = vadd.f32 %v725_v30, %v592_v62  ;;  %v1086_v48 = vmul.f32 %v4323_v29, %v3127_v23  ;;  %v1769_v33 = vadd.f32 %v1705_v52, %v1573_v2  ;;  %v1283_v50 = vmul.f32 %v4445_v37, %v3129_v24 }
  0xa1   :  { %v1346_v7 = vadd.f32 %v1282_v3, %v1149_v26  ;;  %v137_v31 = vmul.f32 %v4205_v13, %v3107_v16  ;;  %v561_v4 = vadd.f32 %v497_v35, %v365_v21  ;;  %v333_v52 = vmul.f32 %v4216_v61, %v3109_v17  ;;  %v4488_v26 = vld [vmem:[%s5711_s0 + $0x2b9] sm:$0xff] }
  0xa2   :  { %v985_v63 = vadd.f32 %v921_v58, %v789_v51  ;;  %v529_v3 = vmul.f32 %v4221_v1, %v3111_v18  ;;  %3034 = vmatprep.mubr.msk.f32.mxu1 %vm1793_vm1, %v1769_v33  ;;  %v1479_v30 = vmul.f32 %v4454_v38, %v3131_v25  ;;  %v1675_v53 = vmul.f32 %v4024_v55, %v4459_v45  ;;  %v4477_v1 = vld [vmem:[%s5711_s0 + $0x2b8] sm:$0xff] }
  0xa3   :  { %v1542_v13 = vadd.f32 %v1478_v8, %v1346_v7  ;;  %v726_v58 = vmul.f32 %v4341_v9, %v3118_v20  ;;  %v758_v19 = vadd.f32 %v694_v41, %v561_v4  ;;  %v397_v46 = vadd.f32 %v333_v52, %v137_v31 }
  0xa4   :  { %v1181_v11 = vadd.f32 %v1117_v12, %v985_v63  ;;  %v922_v61 = vmul.f32 %v4352_v44, %v3125_v22  ;;  %v1118_v32 = vmul.f32 %v4357_v43, %v3127_v23  ;;  %v1315_v62 = vmul.f32 %v4477_v1, %v3129_v24 }
  0xa5   :  { %v1738_v8 = vadd.f32 %v1674_v0, %v1542_v13  ;;  %v106_v12 = vmul.f32 %v4237_v49, %v3107_v16  ;;  %v954_v35 = vadd.f32 %v890_v59, %v758_v19  ;;  %v593_v2 = vadd.f32 %v529_v3, %v397_v46  ;;  %v4493_v0 = vld [vmem:[%s5711_s0 + $0x2ba] sm:$0xff] }
  0xa6   :  { %v1378_v6 = vadd.f32 %v1314_v56, %v1181_v11  ;;  %v302_v41 = vmul.f32 %v4250_v5, %v3109_v17  ;;  %v1511_v49 = vmul.f32 %v4488_v26, %v3131_v25  ;;  %v1707_v56 = vmul.f32 %v4024_v55, %v4493_v0  ;;  %v4509_v5 = vld [vmem:[%s5711_s0 + $0x110] sm:$0xff] }
  0xa7   :  { %2987 = vmatmul.mubr.msk.f32.gmra.mxu0 %vm1793_vm1, %v1738_v8  ;;  %v498_v51 = vmul.f32 %v4255_v40, %v3111_v18  ;;  %v695_v21 = vmul.f32 %v4373_v54, %v3118_v20  ;;  %v1150_v33 = vadd.f32 %v1086_v48, %v954_v35  ;;  %v790_v7 = vadd.f32 %v726_v58, %v593_v2  ;;  %v4522_v58 = vld [vmem:[%s5711_s0 + $0x111] sm:$0xff] }
  0xa8   :  { %v1574_v59 = vadd.f32 %v1510_v10, %v1378_v6  ;;  %v366_v31 = vadd.f32 %v302_v41, %v106_v12  ;;  %v891_v63 = vmul.f32 %v4386_v14, %v3125_v22  ;;  %v1087_v4 = vmul.f32 %v4391_v34, %v3127_v23  ;;  %v4527_v11 = vld [vmem:[%s5711_s0 + $0x112] sm:$0xff]  ;;  %v4543_v6 = vld [vmem:[%s5711_s0 + $0x2c0] sm:$0xff] }
  0xa9   :  { %v1284_v40 = vmul.f32 %v4509_v5, %v3129_v24  ;;  %v138_v10 = vmul.f32 %v4271_v15, %v3107_v16  ;;  %v1347_v52 = vadd.f32 %v1283_v50, %v1150_v33  ;;  %v986_v3 = vadd.f32 %v922_v61, %v790_v7  ;;  %v4563_v7 = vld [vmem:[%s5711_s0 + $0x2c2] sm:$0xff] }
  0xaa   :  { %v1770_v48 = vadd.f32 %v1706_v27, %v1574_v59  ;;  %v562_v13 = vadd.f32 %v498_v51, %v366_v31  ;;  %v1480_v19 = vmul.f32 %v4522_v58, %v3131_v25  ;;  %v1676_v15 = vmul.f32 %v4024_v55, %v4527_v11  ;;  %v4554_v51 = vld [vmem:[%s5711_s0 + $0x2c1] sm:$0xff] }
  0xab   :  { %v334_v27 = vmul.f32 %v4282_v28, %v3109_v17  ;;  %v530_v50 = vmul.f32 %v4291_v39, %v3111_v18  ;;  %v1543_v46 = vadd.f32 %v1479_v30, %v1347_v52  ;;  %v1182_v61 = vadd.f32 %v1118_v32, %v986_v3 }
  0xac   :  { %3035 = vmatmul.mubr.msk.f32.gmra.mxu1 %vm1793_vm1, %v1770_v48  ;;  %v759_v8 = vadd.f32 %v695_v21, %v562_v13  ;;  %v727_v12 = vmul.f32 %v4407_v42, %v3118_v20  ;;  %v923_v28 = vmul.f32 %v4418_v47, %v3125_v22  ;;  %v1119_v39 = vmul.f32 %v4427_v60, %v3127_v23 }
  0xad   :  { %v398_v35 = vadd.f32 %v334_v27, %v138_v10  ;;  %v1316_v30 = vmul.f32 %v4543_v6, %v3129_v24  ;;  %v1739_v32 = vadd.f32 %v1675_v53, %v1543_v46  ;;  %v1379_v2 = vadd.f32 %v1315_v62, %v1182_v61  ;;  %v4590_v61 = vld [vmem:[%s5711_s0 + $0x121] sm:$0xff] }
  0xae   :  { %v955_v41 = vadd.f32 %v891_v63, %v759_v8  ;;  %v107_v21 = vmul.f32 %v4309_v36, %v3107_v16  ;;  %v1512_v33 = vmul.f32 %v4554_v51, %v3131_v25  ;;  %v303_v53 = vmul.f32 %v4318_v57, %v3109_v17  ;;  %v4595_v8 = vld [vmem:[%s5711_s0 + $0x122] sm:$0xff] }
  0xaf   :  { %v594_v59 = vadd.f32 %v530_v50, %v398_v35  ;;  %v499_v62 = vmul.f32 %v4323_v29, %v3111_v18  ;;  %2989 = vmatprep.mubr.msk.f32.mxu0 %vm1793_vm1, %v1739_v32  ;;  %v1575_v31 = vadd.f32 %v1511_v49, %v1379_v2  ;;  %v1708_v36 = vmul.f32 %v4024_v55, %v4563_v7  ;;  %v4581_v29 = vld [vmem:[%s5711_s0 + $0x120] sm:$0xff] }
  0xb0   :  { %v1151_v63 = vadd.f32 %v1087_v4, %v955_v41  ;;  %v696_v10 = vmul.f32 %v4445_v37, %v3118_v20  ;;  %v367_v52 = vadd.f32 %v303_v53, %v107_v21  ;;  %v892_v3 = vmul.f32 %v4454_v38, %v3125_v22 }
  0xb1   :  { %v791_v48 = vadd.f32 %v727_v12, %v594_v59  ;;  %v1088_v57 = vmul.f32 %v4459_v45, %v3127_v23  ;;  %v1771_v49 = vadd.f32 %v1707_v56, %v1575_v31  ;;  %v1285_v13 = vmul.f32 %v4581_v29, %v3129_v24 }
  0xb2   :  { %v1348_v4 = vadd.f32 %v1284_v40, %v1151_v63  ;;  %v139_v27 = vmul.f32 %v4341_v9, %v3107_v16  ;;  %v563_v46 = vadd.f32 %v499_v62, %v367_v52  ;;  %v335_v56 = vmul.f32 %v4352_v44, %v3109_v17  ;;  %v4624_v63 = vld [vmem:[%s5711_s0 + $0x2d1] sm:$0xff] }
  0xb3   :  { %v987_v50 = vadd.f32 %v923_v28, %v791_v48  ;;  %v531_v40 = vmul.f32 %v4357_v43, %v3111_v18  ;;  %3037 = vmatprep.mubr.msk.f32.mxu1 %vm1793_vm1, %v1771_v49  ;;  %v1481_v12 = vmul.f32 %v4590_v61, %v3131_v25  ;;  %v1677_v35 = vmul.f32 %v4024_v55, %v4595_v8  ;;  %v4613_v43 = vld [vmem:[%s5711_s0 + $0x2d0] sm:$0xff] }
  0xb4   :  { %v1544_v9 = vadd.f32 %v1480_v19, %v1348_v4  ;;  %v728_v28 = vmul.f32 %v4477_v1, %v3118_v20  ;;  %v760_v2 = vadd.f32 %v696_v10, %v563_v46  ;;  %v399_v41 = vadd.f32 %v335_v56, %v139_v27 }
  0xb5   :  { %v1183_v32 = vadd.f32 %v1119_v39, %v987_v50  ;;  %v924_v44 = vmul.f32 %v4488_v26, %v3125_v22  ;;  %v1120_v21 = vmul.f32 %v4493_v0, %v3127_v23  ;;  %v1317_v59 = vmul.f32 %v4613_v43, %v3129_v24 }
  0xb6   :  { %v1740_v19 = vadd.f32 %v1676_v15, %v1544_v9  ;;  %v108_v39 = vmul.f32 %v4373_v54, %v3107_v16  ;;  %v956_v62 = vadd.f32 %v892_v3, %v760_v2  ;;  %v595_v31 = vadd.f32 %v531_v40, %v399_v41  ;;  %v4629_v15 = vld [vmem:[%s5711_s0 + $0x2d2] sm:$0xff] }
  0xb7   :  { %v1380_v53 = vadd.f32 %v1316_v30, %v1183_v32  ;;  %v304_v10 = vmul.f32 %v4386_v14, %v3109_v17  ;;  %v1513_v54 = vmul.f32 %v4624_v63, %v3131_v25  ;;  %v1709_v30 = vmul.f32 %v4024_v55, %v4629_v15  ;;  %v4645_v14 = vld [vmem:[%s5711_s0 + $0x128] sm:$0xff] }
  0xb8   :  { %2990 = vmatmul.mubr.msk.f32.gmra.mxu0 %vm1793_vm1, %v1740_v19  ;;  %v500_v48 = vmul.f32 %v4391_v34, %v3111_v18  ;;  %v697_v52 = vmul.f32 %v4509_v5, %v3118_v20  ;;  %v1152_v49 = vadd.f32 %v1088_v57, %v956_v62  ;;  %v792_v4 = vadd.f32 %v728_v28, %v595_v31  ;;  %v4658_v28 = vld [vmem:[%s5711_s0 + $0x129] sm:$0xff] }
  0xb9   :  { %v1576_v3 = vadd.f32 %v1512_v33, %v1380_v53  ;;  %v368_v27 = vadd.f32 %v304_v10, %v108_v39  ;;  %v893_v50 = vmul.f32 %v4522_v58, %v3125_v22  ;;  %v1089_v46 = vmul.f32 %v4527_v11, %v3127_v23  ;;  %v4663_v32 = vld [vmem:[%s5711_s0 + $0x12a] sm:$0xff]  ;;  %v4679_v53 = vld [vmem:[%s5711_s0 + $0x2d8] sm:$0xff] }
  0xba   :  { %v1286_v34 = vmul.f32 %v4645_v14, %v3129_v24  ;;  %v140_v33 = vmul.f32 %v4407_v42, %v3107_v16  ;;  %v1349_v56 = vadd.f32 %v1285_v13, %v1152_v49  ;;  %v988_v40 = vadd.f32 %v924_v44, %v792_v4  ;;  %v4699_v4 = vld [vmem:[%s5711_s0 + $0x2da] sm:$0xff] }
  0xbb   :  { %v1772_v57 = vadd.f32 %v1708_v36, %v1576_v3  ;;  %v564_v9 = vadd.f32 %v500_v48, %v368_v27  ;;  %v1482_v2 = vmul.f32 %v4658_v28, %v3131_v25  ;;  %v1678_v42 = vmul.f32 %v4024_v55, %v4663_v32  ;;  %v4690_v48 = vld [vmem:[%s5711_s0 + $0x2d9] sm:$0xff] }
  0xbc   :  { %v336_v36 = vmul.f32 %v4418_v47, %v3109_v17  ;;  %v532_v13 = vmul.f32 %v4427_v60, %v3111_v18  ;;  %v1545_v41 = vadd.f32 %v1481_v12, %v1349_v56  ;;  %v1184_v44 = vadd.f32 %v1120_v21, %v988_v40 }
  0xbd   :  { %3038 = vmatmul.mubr.msk.f32.gmra.mxu1 %vm1793_vm1, %v1772_v57  ;;  %v761_v19 = vadd.f32 %v697_v52, %v564_v9  ;;  %v729_v39 = vmul.f32 %v4543_v6, %v3118_v20  ;;  %v925_v47 = vmul.f32 %v4554_v51, %v3125_v22  ;;  %v1121_v60 = vmul.f32 %v4563_v7, %v3127_v23 }
  0xbe   :  { %v400_v62 = vadd.f32 %v336_v36, %v140_v33  ;;  %v1318_v12 = vmul.f32 %v4679_v53, %v3129_v24  ;;  %v1741_v21 = vadd.f32 %v1677_v35, %v1545_v41  ;;  %v1381_v31 = vadd.f32 %v1317_v59, %v1184_v44  ;;  %v4726_v44 = vld [vmem:[%s5711_s0 + $0x139] sm:$0xff] }
  0xbf   :  { %v957_v10 = vadd.f32 %v893_v50, %v761_v19  ;;  %v109_v52 = vmul.f32 %v4445_v37, %v3107_v16  ;;  %v1514_v49 = vmul.f32 %v4690_v48, %v3131_v25  ;;  %v305_v35 = vmul.f32 %v4454_v38, %v3109_v17  ;;  %v4731_v19 = vld [vmem:[%s5711_s0 + $0x13a] sm:$0xff] }
  0xc0   :  { %v596_v3 = vadd.f32 %v532_v13, %v400_v62  ;;  %v501_v59 = vmul.f32 %v4459_v45, %v3111_v18  ;;  %2992 = vmatprep.mubr.msk.f32.mxu0 %vm1793_vm1, %v1741_v21  ;;  %v1577_v27 = vadd.f32 %v1513_v54, %v1381_v31  ;;  %v1710_v37 = vmul.f32 %v4024_v55, %v4699_v4  ;;  %v4717_v45 = vld [vmem:[%s5711_s0 + $0x138] sm:$0xff] }
  0xc1   :  { %v1153_v50 = vadd.f32 %v1089_v46, %v957_v10  ;;  %v698_v33 = vmul.f32 %v4581_v29, %v3118_v20  ;;  %v369_v56 = vadd.f32 %v305_v35, %v109_v52  ;;  %v894_v40 = vmul.f32 %v4590_v61, %v3125_v22 }
  0xc2   :  { %v793_v57 = vadd.f32 %v729_v39, %v596_v3  ;;  %v1090_v38 = vmul.f32 %v4595_v8, %v3127_v23  ;;  %v1773_v54 = vadd.f32 %v1709_v30, %v1577_v27  ;;  %v1287_v9 = vmul.f32 %v4717_v45, %v3129_v24 }
  0xc3   :  { %v1350_v46 = vadd.f32 %v1286_v34, %v1153_v50  ;;  %v141_v36 = vmul.f32 %v4477_v1, %v3107_v16  ;;  %v565_v41 = vadd.f32 %v501_v59, %v369_v56  ;;  %v337_v30 = vmul.f32 %v4488_v26, %v3109_v17  ;;  %v4760_v50 = vld [vmem:[%s5711_s0 + $0x2e9] sm:$0xff] }
  0xc4   :  { %v989_v13 = vadd.f32 %v925_v47, %v793_v57  ;;  %v533_v34 = vmul.f32 %v4493_v0, %v3111_v18  ;;  %3040 = vmatprep.mubr.msk.f32.mxu1 %vm1793_vm1, %v1773_v54  ;;  %v1483_v39 = vmul.f32 %v4726_v44, %v3131_v25  ;;  %v1679_v62 = vmul.f32 %v4024_v55, %v4731_v19  ;;  %v4749_v0 = vld [vmem:[%s5711_s0 + $0x2e8] sm:$0xff] }
  0xc5   :  { %v1546_v1 = vadd.f32 %v1482_v2, %v1350_v46  ;;  %v730_v47 = vmul.f32 %v4613_v43, %v3118_v20  ;;  %v762_v31 = vadd.f32 %v698_v33, %v565_v41  ;;  %v401_v10 = vadd.f32 %v337_v30, %v141_v36 }
  0xc6   :  { %v1185_v21 = vadd.f32 %v1121_v60, %v989_v13  ;;  %v926_v26 = vmul.f32 %v4624_v63, %v3125_v22  ;;  %v1122_v52 = vmul.f32 %v4629_v15, %v3127_v23  ;;  %v1319_v3 = vmul.f32 %v4749_v0, %v3129_v24 }
  0xc7   :  { %v1742_v2 = vadd.f32 %v1678_v42, %v1546_v1  ;;  %v110_v60 = vmul.f32 %v4509_v5, %v3107_v16  ;;  %v958_v59 = vadd.f32 %v894_v40, %v762_v31  ;;  %v597_v27 = vadd.f32 %v533_v34, %v401_v10  ;;  %v4765_v42 = vld [vmem:[%s5711_s0 + $0x2ea] sm:$0xff] }
  0xc8   :  { %v1382_v35 = vadd.f32 %v1318_v12, %v1185_v21  ;;  %v306_v33 = vmul.f32 %v4522_v58, %v3109_v17  ;;  %v1515_v5 = vmul.f32 %v4760_v50, %v3131_v25  ;;  %v1711_v12 = vmul.f32 %v4024_v55, %v4765_v42  ;;  %v4781_v58 = vld [vmem:[%s5711_s0 + $0x140] sm:$0xff] }
  0xc9   :  { %2993 = vmatmul.mubr.msk.f32.gmra.mxu0 %vm1793_vm1, %v1742_v2  ;;  %v502_v57 = vmul.f32 %v4527_v11, %v3111_v18  ;;  %v699_v56 = vmul.f32 %v4645_v14, %v3118_v20  ;;  %v1154_v54 = vadd.f32 %v1090_v38, %v958_v59  ;;  %v794_v46 = vadd.f32 %v730_v47, %v597_v27  ;;  %v4794_v47 = vld [vmem:[%s5711_s0 + $0x141] sm:$0xff] }
  0xca   :  { %v1578_v40 = vadd.f32 %v1514_v49, %v1382_v35  ;;  %v370_v36 = vadd.f32 %v306_v33, %v110_v60  ;;  %v895_v13 = vmul.f32 %v4658_v28, %v3125_v22  ;;  %v1091_v41 = vmul.f32 %v4663_v32, %v3127_v23  ;;  %v4799_v21 = vld [vmem:[%s5711_s0 + $0x142] sm:$0xff]  ;;  %v4815_v35 = vld [vmem:[%s5711_s0 + $0x2f0] sm:$0xff] }
  0xcb   :  { %v1288_v11 = vmul.f32 %v4781_v58, %v3129_v24  ;;  %v142_v49 = vmul.f32 %v4543_v6, %v3107_v16  ;;  %v1351_v30 = vadd.f32 %v1287_v9, %v1154_v54  ;;  %v990_v34 = vadd.f32 %v926_v26, %v794_v46  ;;  %v4835_v46 = vld [vmem:[%s5711_s0 + $0x2f2] sm:$0xff] }
  0xcc   :  { %v1774_v38 = vadd.f32 %v1710_v37, %v1578_v40  ;;  %v566_v1 = vadd.f32 %v502_v57, %v370_v36  ;;  %v1484_v31 = vmul.f32 %v4794_v47, %v3131_v25  ;;  %v1680_v6 = vmul.f32 %v4024_v55, %v4799_v21  ;;  %v4826_v57 = vld [vmem:[%s5711_s0 + $0x2f1] sm:$0xff] }
  0xcd   :  { %v338_v37 = vmul.f32 %v4554_v51, %v3109_v17  ;;  %v534_v9 = vmul.f32 %v4563_v7, %v3111_v18  ;;  %v1547_v10 = vadd.f32 %v1483_v39, %v1351_v30  ;;  %v1186_v26 = vadd.f32 %v1122_v52, %v990_v34 }
  0xce   :  { %3041 = vmatmul.mubr.msk.f32.gmra.mxu1 %vm1793_vm1, %v1774_v38  ;;  %v763_v2 = vadd.f32 %v699_v56, %v566_v1  ;;  %v731_v60 = vmul.f32 %v4679_v53, %v3118_v20  ;;  %v927_v51 = vmul.f32 %v4690_v48, %v3125_v22  ;;  %v1123_v7 = vmul.f32 %v4699_v4, %v3127_v23 }
  0xcf   :  { %v402_v59 = vadd.f32 %v338_v37, %v142_v49  ;;  %v1320_v39 = vmul.f32 %v4815_v35, %v3129_v24  ;;  %v1743_v52 = vadd.f32 %v1679_v62, %v1547_v10  ;;  %v1383_v27 = vadd.f32 %v1319_v3, %v1186_v26  ;;  %v4862_v10 = vld [vmem:[%s5711_s0 + $0x151] sm:$0xff] }
  0xd0   :  { %v959_v33 = vadd.f32 %v895_v13, %v763_v2  ;;  %v111_v56 = vmul.f32 %v4581_v29, %v3107_v16  ;;  %v1516_v54 = vmul.f32 %v4826_v57, %v3131_v25  ;;  %v307_v62 = vmul.f32 %v4590_v61, %v3109_v17  ;;  %v4867_v26 = vld [vmem:[%s5711_s0 + $0x152] sm:$0xff] }
  0xd1   :  { %v598_v40 = vadd.f32 %v534_v9, %v402_v59  ;;  %v503_v3 = vmul.f32 %v4595_v8, %v3111_v18  ;;  %2995 = vmatprep.mubr.msk.f32.mxu0 %vm1793_vm1, %v1743_v52  ;;  %v1579_v36 = vadd.f32 %v1515_v5, %v1383_v27  ;;  %v1712_v29 = vmul.f32 %v4024_v55, %v4835_v46  ;;  %v4853_v8 = vld [vmem:[%s5711_s0 + $0x150] sm:$0xff]  ;;  %v4890_v27 = vld [vmem:[%s5711_s0 + $0x300] sm:$0xff] }
  0xd2   :  { %v1155_v13 = vadd.f32 %v1091_v41, %v959_v33  ;;  %v700_v49 = vmul.f32 %v4717_v45, %v3118_v20  ;;  %v371_v30 = vadd.f32 %v307_v62, %v111_v56  ;;  %v896_v34 = vmul.f32 %v4726_v44, %v3125_v22 }
  0xd3   :  { %v795_v38 = vadd.f32 %v731_v60, %v598_v40  ;;  %v1092_v61 = vmul.f32 %v4731_v19, %v3127_v23  ;;  %v1775_v5 = vadd.f32 %v1711_v12, %v1579_v36  ;;  %v1289_v55 = vmul.f32 %v4853_v8, %v3129_v24  ;;  %v4879_v60 = vld [vmem:[%s5710_s1 + $0x8] ss:$0 sm:$0xff] }
  0xd4   :  { %v1352_v41 = vadd.f32 %v1288_v11, %v1155_v13  ;;  %v143_v1 = vmul.f32 %v4613_v43, %v3107_v16  ;;  %v567_v9 = vadd.f32 %v503_v3, %v371_v30  ;;  %v339_v12 = vmul.f32 %v4624_v63, %v3109_v17  ;;  %v4901_v13 = vld [vmem:[%s5711_s0 + $0x301] sm:$0xff] }
  0xd5   :  { %v991_v37 = vadd.f32 %v927_v51, %v795_v38  ;;  %v535_v11 = vmul.f32 %v4629_v15, %v3111_v18  ;;  %3043 = vmatprep.mubr.msk.f32.mxu1 %vm1793_vm1, %v1775_v5  ;;  %v1485_v2 = vmul.f32 %v4862_v10, %v3131_v25  ;;  %v1681_v59 = vmul.f32 %v4879_v60, %v4867_v26 }
  0xd6   :  { %v1548_v43 = vadd.f32 %v1484_v31, %v1352_v41  ;;  %v732_v63 = vmul.f32 %v4749_v0, %v3118_v20  ;;  %v764_v52 = vadd.f32 %v700_v49, %v567_v9  ;;  %v403_v15 = vadd.f32 %v339_v12, %v143_v1 }
  0xd7   :  { %v1187_v51 = vadd.f32 %v1123_v7, %v991_v37  ;;  %v928_v31 = vmul.f32 %v4760_v50, %v3125_v22  ;;  %v1124_v56 = vmul.f32 %v4765_v42, %v3127_v23  ;;  %v1321_v40 = vmul.f32 %v4890_v27, %v3129_v24 }
  0xd8   :  { %v1744_v33 = vadd.f32 %v1680_v6, %v1548_v43  ;;  %v112_v7 = vmul.f32 %v4645_v14, %v3107_v16  ;;  %v960_v3 = vadd.f32 %v896_v34, %v764_v52  ;;  %v599_v36 = vadd.f32 %v535_v11, %v403_v15  ;;  %v4906_v6 = vld [vmem:[%s5711_s0 + $0x302] sm:$0xff] }
  0xd9   :  { %v1384_v62 = vadd.f32 %v1320_v39, %v1187_v51  ;;  %v308_v49 = vmul.f32 %v4658_v28, %v3109_v17  ;;  %v1517_v14 = vmul.f32 %v4901_v13, %v3131_v25  ;;  %v1713_v39 = vmul.f32 %v4879_v60, %v4906_v6  ;;  %v4922_v28 = vld [vmem:[%s5711_s0 + $0x158] sm:$0xff] }
  0xda   :  { %2996 = vmatmul.mubr.msk.f32.gmra.mxu0 %vm1793_vm1, %v1744_v33  ;;  %v504_v38 = vmul.f32 %v4663_v32, %v3111_v18  ;;  %v701_v30 = vmul.f32 %v4781_v58, %v3118_v20  ;;  %v1156_v5 = vadd.f32 %v1092_v61, %v960_v3  ;;  %v796_v41 = vadd.f32 %v732_v63, %v599_v36  ;;  %v4935_v63 = vld [vmem:[%s5711_s0 + $0x159] sm:$0xff] }
  0xdb   :  { %v1580_v34 = vadd.f32 %v1516_v54, %v1384_v62  ;;  %v372_v1 = vadd.f32 %v308_v49, %v112_v7  ;;  %v897_v37 = vmul.f32 %v4794_v47, %v3125_v22  ;;  %v1093_v9 = vmul.f32 %v4799_v21, %v3127_v23  ;;  %v4940_v51 = vld [vmem:[%s5711_s0 + $0x15a] sm:$0xff]  ;;  %v4956_v62 = vld [vmem:[%s5711_s0 + $0x308] sm:$0xff] }
  0xdc   :  { %v1290_v32 = vmul.f32 %v4922_v28, %v3129_v24  ;;  %v144_v54 = vmul.f32 %v4679_v53, %v3107_v16  ;;  %v1353_v12 = vadd.f32 %v1289_v55, %v1156_v5  ;;  %v992_v11 = vadd.f32 %v928_v31, %v796_v41  ;;  %v4976_v41 = vld [vmem:[%s5711_s0 + $0x30a] sm:$0xff] }
  0xdd   :  { %v1776_v61 = vadd.f32 %v1712_v29, %v1580_v34  ;;  %v568_v43 = vadd.f32 %v504_v38, %v372_v1  ;;  %v1486_v52 = vmul.f32 %v4935_v63, %v3131_v25  ;;  %v1682_v53 = vmul.f32 %v4879_v60, %v4940_v51  ;;  %v4967_v38 = vld [vmem:[%s5711_s0 + $0x309] sm:$0xff] }
  0xde   :  { %v340_v29 = vmul.f32 %v4690_v48, %v3109_v17  ;;  %v536_v55 = vmul.f32 %v4699_v4, %v3111_v18  ;;  %v1549_v15 = vadd.f32 %v1485_v2, %v1353_v12  ;;  %v1188_v31 = vadd.f32 %v1124_v56, %v992_v11 }
  0xdf   :  { %3044 = vmatmul.mubr.msk.f32.gmra.mxu1 %vm1793_vm1, %v1776_v61  ;;  %v765_v33 = vadd.f32 %v701_v30, %v568_v43  ;;  %v733_v7 = vmul.f32 %v4815_v35, %v3118_v20  ;;  %v929_v48 = vmul.f32 %v4826_v57, %v3125_v22  ;;  %v1125_v4 = vmul.f32 %v4835_v46, %v3127_v23 }
  0xe0   :  { %v404_v3 = vadd.f32 %v340_v29, %v144_v54  ;;  %v1322_v2 = vmul.f32 %v4956_v62, %v3129_v24  ;;  %v1745_v56 = vadd.f32 %v1681_v59, %v1549_v15  ;;  %v1385_v36 = vadd.f32 %v1321_v40, %v1188_v31  ;;  %v5003_v31 = vld [vmem:[%s5711_s0 + $0x169] sm:$0xff] }
  0xe1   :  { %v961_v49 = vadd.f32 %v897_v37, %v765_v33  ;;  %v113_v30 = vmul.f32 %v4717_v45, %v3107_v16  ;;  %v1518_v5 = vmul.f32 %v4967_v38, %v3131_v25  ;;  %v309_v59 = vmul.f32 %v4726_v44, %v3109_v17  ;;  %v5008_v33 = vld [vmem:[%s5711_s0 + $0x16a] sm:$0xff] }
  0xe2   :  { %v600_v34 = vadd.f32 %v536_v55, %v404_v3  ;;  %v505_v40 = vmul.f32 %v4731_v19, %v3111_v18  ;;  %2998 = vmatprep.mubr.msk.f32.mxu0 %vm1793_vm1, %v1745_v56  ;;  %v1581_v1 = vadd.f32 %v1517_v14, %v1385_v36  ;;  %v1714_v45 = vmul.f32 %v4879_v60, %v4976_v41  ;;  %v4994_v19 = vld [vmem:[%s5711_s0 + $0x168] sm:$0xff] }
  0xe3   :  { %v1157_v37 = vadd.f32 %v1093_v9, %v961_v49  ;;  %v702_v54 = vmul.f32 %v4853_v8, %v3118_v20  ;;  %v373_v12 = vadd.f32 %v309_v59, %v113_v30  ;;  %v898_v11 = vmul.f32 %v4862_v10, %v3125_v22 }
  0xe4   :  { %v797_v61 = vadd.f32 %v733_v7, %v600_v34  ;;  %v1094_v44 = vmul.f32 %v4867_v26, %v3127_v23  ;;  %v1777_v14 = vadd.f32 %v1713_v39, %v1581_v1  ;;  %v1291_v43 = vmul.f32 %v4994_v19, %v3129_v24 }
  0xe5   :  { %v1354_v9 = vadd.f32 %v1290_v32, %v1157_v37  ;;  %v145_v29 = vmul.f32 %v4749_v0, %v3107_v16  ;;  %v569_v15 = vadd.f32 %v505_v40, %v373_v12  ;;  %v341_v39 = vmul.f32 %v4760_v50, %v3109_v17  ;;  %v5037_v37 = vld [vmem:[%s5711_s0 + $0x319] sm:$0xff] }
  0xe6   :  { %v993_v55 = vadd.f32 %v929_v48, %v797_v61  ;;  %v537_v32 = vmul.f32 %v4765_v42, %v3111_v18  ;;  %3046 = vmatprep.mubr.msk.f32.mxu1 %vm1793_vm1, %v1777_v14  ;;  %v1487_v7 = vmul.f32 %v5003_v31, %v3131_v25  ;;  %v1683_v3 = vmul.f32 %v4879_v60, %v5008_v33  ;;  %v5026_v42 = vld [vmem:[%s5711_s0 + $0x318] sm:$0xff] }
  0xe7   :  { %v1550_v0 = vadd.f32 %v1486_v52, %v1354_v9  ;;  %v734_v48 = vmul.f32 %v4890_v27, %v3118_v20  ;;  %v766_v36 = vadd.f32 %v702_v54, %v569_v15  ;;  %v405_v49 = vadd.f32 %v341_v39, %v145_v29 }
  0xe8   :  { %v1189_v56 = vadd.f32 %v1125_v4, %v993_v55  ;;  %v930_v50 = vmul.f32 %v4901_v13, %v3125_v22  ;;  %v1126_v30 = vmul.f32 %v4906_v6, %v3127_v23  ;;  %v1323_v34 = vmul.f32 %v5026_v42, %v3129_v24 }
  0xe9   :  { %v1746_v52 = vadd.f32 %v1682_v53, %v1550_v0  ;;  %v114_v4 = vmul.f32 %v4781_v58, %v3107_v16  ;;  %v962_v40 = vadd.f32 %v898_v11, %v766_v36  ;;  %v601_v1 = vadd.f32 %v537_v32, %v405_v49  ;;  %v5042_v53 = vld [vmem:[%s5711_s0 + $0x31a] sm:$0xff] }
  0xea   :  { %v1386_v59 = vadd.f32 %v1322_v2, %v1189_v56  ;;  %v310_v54 = vmul.f32 %v4794_v47, %v3109_v17  ;;  %v1519_v58 = vmul.f32 %v5037_v37, %v3131_v25  ;;  %v1715_v2 = vmul.f32 %v4879_v60, %v5042_v53  ;;  %v5058_v47 = vld [vmem:[%s5711_s0 + $0x170] sm:$0xff] }
  0xeb   :  { %2999 = vmatmul.mubr.msk.f32.gmra.mxu0 %vm1793_vm1, %v1746_v52  ;;  %v506_v61 = vmul.f32 %v4799_v21, %v3111_v18  ;;  %v703_v12 = vmul.f32 %v4922_v28, %v3118_v20  ;;  %v1158_v14 = vadd.f32 %v1094_v44, %v962_v40  ;;  %v798_v9 = vadd.f32 %v734_v48, %v601_v1  ;;  %v5071_v48 = vld [vmem:[%s5711_s0 + $0x171] sm:$0xff] }
  0xec   :  { %v1582_v11 = vadd.f32 %v1518_v5, %v1386_v59  ;;  %v374_v29 = vadd.f32 %v310_v54, %v114_v4  ;;  %v899_v55 = vmul.f32 %v4935_v63, %v3125_v22  ;;  %v1095_v15 = vmul.f32 %v4940_v51, %v3127_v23  ;;  %v5076_v56 = vld [vmem:[%s5711_s0 + $0x172] sm:$0xff]  ;;  %v5092_v59 = vld [vmem:[%s5711_s0 + $0x320] sm:$0xff] }
  0xed   :  { %v1292_v21 = vmul.f32 %v5058_v47, %v3129_v24  ;;  %v146_v5 = vmul.f32 %v4815_v35, %v3107_v16  ;;  %v1355_v39 = vadd.f32 %v1291_v43, %v1158_v14  ;;  %v994_v32 = vadd.f32 %v930_v50, %v798_v9  ;;  %v5112_v9 = vld [vmem:[%s5711_s0 + $0x322] sm:$0xff] }
  0xee   :  { %v1778_v44 = vadd.f32 %v1714_v45, %v1582_v11  ;;  %v570_v0 = vadd.f32 %v506_v61, %v374_v29  ;;  %v1488_v36 = vmul.f32 %v5071_v48, %v3131_v25  ;;  %v1684_v35 = vmul.f32 %v4879_v60, %v5076_v56  ;;  %v5103_v61 = vld [vmem:[%s5711_s0 + $0x321] sm:$0xff] }
  0xef   :  { %v342_v45 = vmul.f32 %v4826_v57, %v3109_v17  ;;  %v538_v43 = vmul.f32 %v4835_v46, %v3111_v18  ;;  %v1551_v49 = vadd.f32 %v1487_v7, %v1355_v39  ;;  %v1190_v50 = vadd.f32 %v1126_v30, %v994_v32 }
  0xf0   :  { %3047 = vmatmul.mubr.msk.f32.gmra.mxu1 %vm1793_vm1, %v1778_v44  ;;  %v767_v52 = vadd.f32 %v703_v12, %v570_v0  ;;  %v735_v4 = vmul.f32 %v4956_v62, %v3118_v20  ;;  %v931_v57 = vmul.f32 %v4967_v38, %v3125_v22  ;;  %v1127_v46 = vmul.f32 %v4976_v41, %v3127_v23 }
  0xf1   :  { %v406_v40 = vadd.f32 %v342_v45, %v146_v5  ;;  %v1324_v7 = vmul.f32 %v5092_v59, %v3129_v24  ;;  %v1747_v30 = vadd.f32 %v1683_v3, %v1551_v49  ;;  %v1387_v1 = vadd.f32 %v1323_v34, %v1190_v50  ;;  %v5139_v50 = vld [vmem:[%s5711_s0 + $0x181] sm:$0xff] }
  0xf2   :  { %v963_v54 = vadd.f32 %v899_v55, %v767_v52  ;;  %v115_v12 = vmul.f32 %v4853_v8, %v3107_v16  ;;  %v1520_v14 = vmul.f32 %v5103_v61, %v3131_v25  ;;  %v311_v3 = vmul.f32 %v4862_v10, %v3109_v17  ;;  %v5144_v52 = vld [vmem:[%s5711_s0 + $0x182] sm:$0xff] }
  0xf3   :  { %v602_v11 = vadd.f32 %v538_v43, %v406_v40  ;;  %v507_v34 = vmul.f32 %v4867_v26, %v3111_v18  ;;  %3001 = vmatprep.mubr.msk.f32.mxu0 %vm1793_vm1, %v1747_v30  ;;  %v1583_v29 = vadd.f32 %v1519_v58, %v1387_v1  ;;  %v1716_v8 = vmul.f32 %v4879_v60, %v5112_v9  ;;  %v5130_v26 = vld [vmem:[%s5711_s0 + $0x180] sm:$0xff] }
  0xf4   :  { %v1159_v55 = vadd.f32 %v1095_v15, %v963_v54  ;;  %v704_v5 = vmul.f32 %v4994_v19, %v3118_v20  ;;  %v375_v39 = vadd.f32 %v311_v3, %v115_v12  ;;  %v900_v32 = vmul.f32 %v5003_v31, %v3125_v22 }
  0xf5   :  { %v799_v44 = vadd.f32 %v735_v4, %v602_v11  ;;  %v1096_v10 = vmul.f32 %v5008_v33, %v3127_v23  ;;  %v1779_v58 = vadd.f32 %v1715_v2, %v1583_v29  ;;  %v1293_v0 = vmul.f32 %v5130_v26, %v3129_v24 }
  0xf6   :  { %v1356_v15 = vadd.f32 %v1292_v21, %v1159_v55  ;;  %v147_v45 = vmul.f32 %v4890_v27, %v3107_v16  ;;  %v571_v49 = vadd.f32 %v507_v34, %v375_v39  ;;  %v343_v2 = vmul.f32 %v4901_v13, %v3109_v17  ;;  %v5173_v55 = vld [vmem:[%s5711_s0 + $0x331] sm:$0xff] }
  0xf7   :  { %v995_v43 = vadd.f32 %v931_v57, %v799_v44  ;;  %v539_v21 = vmul.f32 %v4906_v6, %v3111_v18  ;;  %3049 = vmatprep.mubr.msk.f32.mxu1 %vm1793_vm1, %v1779_v58  ;;  %v1489_v4 = vmul.f32 %v5139_v50, %v3131_v25  ;;  %v1685_v40 = vmul.f32 %v4879_v60, %v5144_v52  ;;  %v5162_v6 = vld [vmem:[%s5711_s0 + $0x330] sm:$0xff]  ;;  %v5182_v44 = vpop.f32.mrf.mxu0 }
  0xf8   :  { %v1552_v27 = vadd.f32 %v1488_v36, %v1356_v15  ;;  %v736_v57 = vmul.f32 %v5026_v42, %v3118_v20  ;;  %v768_v1 = vadd.f32 %v704_v5, %v571_v49  ;;  %v407_v54 = vadd.f32 %v343_v2, %v147_v45 }
  0xf9   :  { %v1191_v30 = vadd.f32 %v1127_v46, %v995_v43  ;;  %v932_v13 = vmul.f32 %v5037_v37, %v3125_v22  ;;  %v1128_v12 = vmul.f32 %v5042_v53, %v3127_v23  ;;  %v1325_v11 = vmul.f32 %v5162_v6, %v3129_v24  ;;  %v5196_v43 = vld [vmem:[%s5711_s0 + $0x188] sm:$0xff] }
  0xfa   :  { %v1748_v36 = vadd.f32 %v1684_v35, %v1552_v27  ;;  %v116_v46 = vmul.f32 %v4922_v28, %v3107_v16  ;;  %v964_v34 = vadd.f32 %v900_v32, %v768_v1  ;;  %v603_v29 = vadd.f32 %v539_v21, %v407_v54  ;;  %v5178_v35 = vld [vmem:[%s5711_s0 + $0x332] sm:$0xff]  ;;  %v5214_v1 = vld [vmem:[%s5711_s0 + $0x18a] sm:$0xff]  ;;  %v5216_v54 = vpop.f32.mrf.mxu1 }
  0xfb   :  { %v1388_v3 = vadd.f32 %v1324_v7, %v1191_v30  ;;  %v312_v5 = vmul.f32 %v4935_v63, %v3109_v17  ;;  %v1521_v28 = vmul.f32 %v5173_v55, %v3131_v25  ;;  %v1717_v7 = vmul.f32 %v4879_v60, %v5178_v35  ;;  %v5209_v30 = vld [vmem:[%s5711_s0 + $0x189] sm:$0xff] }
  0xfc   :  { %3002 = vmatmul.mubr.msk.f32.gmra.mxu0 %vm1793_vm1, %v1748_v36  ;;  %v508_v39 = vmul.f32 %v4940_v51, %v3111_v18  ;;  %v705_v32 = vmul.f32 %v5058_v47, %v3118_v20  ;;  %v1160_v15 = vadd.f32 %v1096_v10, %v964_v34  ;;  %v800_v45 = vadd.f32 %v736_v57, %v603_v29  ;;  %v5218_v36 = vpop.f32.mrf.mxu0 }
  0xfd   :  { %v1584_v58 = vadd.f32 %v1520_v14, %v1388_v3  ;;  %v376_v63 = vadd.f32 %v312_v5, %v116_v46  ;;  %v901_v49 = vmul.f32 %v5071_v48, %v3125_v22  ;;  %v1097_v2 = vmul.f32 %v5076_v56, %v3127_v23  ;;  %v5234_v5 = vld [vmem:[%s5711_s0 + $0x338] sm:$0xff] }
  0xfe   :  { %v1294_v51 = vmul.f32 %v5196_v43, %v3129_v24  ;;  %v148_v14 = vmul.f32 %v4956_v62, %v3107_v16  ;;  %v1357_v21 = vadd.f32 %v1293_v0, %v1160_v15  ;;  %v996_v27 = vadd.f32 %v932_v13, %v800_v45  ;;  %v5245_v15 = vld [vmem:[%s5711_s0 + $0x339] sm:$0xff] }
  0xff   :  { %v1780_v10 = vadd.f32 %v1716_v8, %v1584_v58  ;;  %v572_v57 = vadd.f32 %v508_v39, %v376_v63  ;;  %v1490_v62 = vmul.f32 %v5209_v30, %v3131_v25  ;;  %v1686_v8 = vmul.f32 %v4879_v60, %v5214_v1  ;;  %v5249_v63 = vpop.f32.mrf.mxu1 }
 0x100   :  { %v344_v0 = vmul.f32 %v4967_v38, %v3109_v17  ;;  %v540_v13 = vmul.f32 %v4976_v41, %v3111_v18  ;;  %v1553_v46 = vadd.f32 %v1489_v4, %v1357_v21  ;;  %v1192_v3 = vadd.f32 %v1128_v12, %v996_v27 }
 0x101   :  { %3050 = vmatmul.mubr.msk.f32.gmra.mxu1 %vm1793_vm1, %v1780_v10  ;;  %v769_v34 = vadd.f32 %v705_v32, %v572_v57  ;;  %v737_v29 = vmul.f32 %v5092_v59, %v3118_v20  ;;  %v933_v38 = vmul.f32 %v5103_v61, %v3125_v22  ;;  %v1129_v41 = vmul.f32 %v5112_v9, %v3127_v23 }
 0x102   :  { %v408_v39 = vadd.f32 %v344_v0, %v148_v14  ;;  %v1326_v4 = vmul.f32 %v5234_v5, %v3129_v24  ;;  %v1749_v12 = vadd.f32 %v1685_v40, %v1553_v46  ;;  %v1389_v32 = vadd.f32 %v1325_v11, %v1192_v3  ;;  %v5251_v14 = vpop.f32.mrf.mxu0  ;;  %v5258_v40 = vld [vmem:[%s5711_s0 + $0x33a] sm:$0xff] }
 0x103   :  { %v965_v58 = vadd.f32 %v901_v49, %v769_v34  ;;  %v117_v45 = vmul.f32 %v4994_v19, %v3107_v16  ;;  %v1522_v21 = vmul.f32 %v5245_v15, %v3131_v25  ;;  %v313_v11 = vmul.f32 %v5003_v31, %v3109_v17  ;;  %v2666_v19 = vld [vmem:[%s5711_s0 + $0x198] sm:$0xff] }
 0x104   :  { %v604_v10 = vadd.f32 %v540_v13, %v408_v39  ;;  %v509_v49 = vmul.f32 %v5008_v33, %v3111_v18  ;;  %3004 = vmatprep.mubr.msk.f32.mxu0 %vm1793_vm1, %v1749_v12  ;;  %v1585_v27 = vadd.f32 %v1521_v28, %v1389_v32  ;;  %v1718_v0 = vmul.f32 %v4879_v60, %v5258_v40  ;;  %v2730_v34 = vld [vmem:[%s5711_s0 + $0x199] sm:$0xff]  ;;  %v5285_v12 = vpop.f32.mrf.mxu1 }
 0x105   :  { %v1161_v57 = vadd.f32 %v1097_v2, %v965_v58  ;;  %v706_v13 = vmul.f32 %v5130_v26, %v3118_v20  ;;  %v377_v3 = vadd.f32 %v313_v11, %v117_v45  ;;  %v902_v31 = vmul.f32 %v5139_v50, %v3125_v22  ;;  %v2794_v28 = vld [vmem:[%s5711_s0 + $0x19a] sm:$0xff]  ;;  %v5287_v50 = vpop.f32.mrf.mxu0 }
 0x106   :  { %v801_v46 = vadd.f32 %v737_v29, %v604_v10  ;;  %v1098_v33 = vmul.f32 %v5144_v52, %v3127_v23  ;;  %v1781_v2 = vadd.f32 %v1717_v7, %v1585_v27  ;;  %v1295_v26 = vmul.f32 %v2666_v19, %v3129_v24  ;;  %v2698_v7 = vld [vmem:[%s5711_s0 + $0x348] sm:$0xff] }
 0x107   :  { %v1358_v39 = vadd.f32 %v1294_v51, %v1161_v57  ;;  %v149_v29 = vmul.f32 %v5026_v42, %v3107_v16  ;;  %v573_v32 = vadd.f32 %v509_v49, %v377_v3  ;;  %v345_v58 = vmul.f32 %v5037_v37, %v3109_v17  ;;  %v2762_v19 = vld [vmem:[%s5711_s0 + $0x349] sm:$0xff] }
 0x108   :  { %v997_v52 = vadd.f32 %v933_v38, %v801_v46  ;;  %v541_v45 = vmul.f32 %v5042_v53, %v3111_v18  ;;  %3052 = vmatprep.mubr.msk.f32.mxu1 %vm1793_vm1, %v1781_v2  ;;  %v1491_v42 = vmul.f32 %v2730_v34, %v3131_v25  ;;  %v1687_v10 = vmul.f32 %v4879_v60, %v2794_v28 }
 0x109   :  { %v1554_v51 = vadd.f32 %v1490_v62, %v1358_v39  ;;  %v738_v38 = vmul.f32 %v5162_v6, %v3118_v20  ;;  %v770_v49 = vadd.f32 %v706_v13, %v573_v32  ;;  %v409_v37 = vadd.f32 %v345_v58, %v149_v29  ;;  %v2826_v62 = vld [vmem:[%s5711_s0 + $0x34a] sm:$0xff]  ;;  %v5314_v13 = vpop.f32.mrf.mxu1  ;;  %v2795_v32 = vld [vmem:[%s5711_s0 + $0x1a2] sm:$0xff] }
 0x10a   :  { %v1193_v11 = vadd.f32 %v1129_v41, %v997_v52  ;;  %v934_v53 = vmul.f32 %v5173_v55, %v3125_v22  ;;  %v1130_v57 = vmul.f32 %v5178_v35, %v3127_v23  ;;  %v1327_v6 = vmul.f32 %v2698_v7, %v3129_v24  ;;  %v5316_v55 = vpop.f32.mrf.mxu0  ;;  %v2731_v52 = vld [vmem:[%s5711_s0 + $0x1a1] sm:$0xff] }
 0x10b   :  { %v1750_v27 = vadd.f32 %v1686_v8, %v1554_v51  ;;  %v118_v41 = vmul.f32 %v5058_v47, %v3107_v16  ;;  %v966_v3 = vadd.f32 %v902_v31, %v770_v49  ;;  %v605_v34 = vadd.f32 %v541_v45, %v409_v37  ;;  %v2667_v8 = vld [vmem:[%s5711_s0 + $0x1a0] sm:$0xff]  ;;  %v2699_v49 = vld [vmem:[%s5711_s0 + $0x350] sm:$0xff] }
 0x10c   :  { %v1390_v46 = vadd.f32 %v1326_v4, %v1193_v11  ;;  %v314_v28 = vmul.f32 %v5071_v48, %v3109_v17  ;;  %v1523_v35 = vmul.f32 %v2762_v19, %v3131_v25  ;;  %v1719_v47 = vmul.f32 %v4879_v60, %v2826_v62  ;;  %v2076_v45 = vpop.f32.mrf.mxu0 }
 0x10d   :  { %3005 = vmatmul.mubr.msk.f32.gmra.mxu0 %vm1793_vm1, %v1750_v27  ;;  %v510_v2 = vmul.f32 %v5076_v56, %v3111_v18  ;;  %v707_v4 = vmul.f32 %v5196_v43, %v3118_v20  ;;  %v1162_v39 = vadd.f32 %v1098_v33, %v966_v3  ;;  %v802_v29 = vadd.f32 %v738_v38, %v605_v34  ;;  %v3018_v33 = vpop.f32.mrf.mxu1  ;;  %v2763_v34 = vld [vmem:[%s5711_s0 + $0x351] sm:$0xff] }
 0x10e   :  { %v1586_v31 = vadd.f32 %v1522_v21, %v1390_v46  ;;  %v378_v48 = vadd.f32 %v314_v28, %v118_v41  ;;  %v903_v58 = vmul.f32 %v5209_v30, %v3125_v22  ;;  %v1099_v56 = vmul.f32 %v5214_v1, %v3127_v23 }
 0x10f   :  { %v1296_v43 = vmul.f32 %v2667_v8, %v3129_v24  ;;  %v150_v21 = vmul.f32 %v5092_v59, %v3107_v16  ;;  %v1359_v51 = vadd.f32 %v1295_v26, %v1162_v39  ;;  %v998_v38 = vadd.f32 %v934_v53, %v802_v29  ;;  %v5357_v59 = vld [vmem:[%s5712_s3] ss:$0 sm:$0xff] }
 0x110   :  { %v1782_v7 = vadd.f32 %v1718_v0, %v1586_v31  ;;  %v574_v11 = vadd.f32 %v510_v2, %v378_v48  ;;  %v1492_v30 = vmul.f32 %v2731_v52, %v3131_v25  ;;  %v5348_v37 = vmul.f32 %v4879_v60, %v2795_v32  ;;  %v2827_v2 = vld [vmem:[%s5711_s0 + $0x352] sm:$0xff] }
 0x111   :  { %v346_v1 = vmul.f32 %v5103_v61, %v3109_v17  ;;  %v542_v16 = vmul.f32 %v5112_v9, %v3111_v18  ;;  %v1555_v0 = vadd.f32 %v1491_v42, %v1359_v51  ;;  %v1194_v26 = vadd.f32 %v1130_v57, %v998_v38  ;;  %v2236_v9 = vpop.f32.mrf.mxu1 }
 0x112   :  { %3053 = vmatmul.mubr.msk.f32.gmra.mxu1 %vm1793_vm1, %v1782_v7  ;;  %v771_v53 = vadd.f32 %v707_v4, %v574_v11  ;;  %v739_v19 = vmul.f32 %v5234_v5, %v3118_v20  ;;  %v935_v17 = vmul.f32 %v5245_v15, %v3125_v22  ;;  %v1131_v18 = vmul.f32 %v5258_v40, %v3127_v23  ;;  %v2973_v27 = vpop.f32.mrf.mxu0 }
 0x113   :  { %v410_v62 = vadd.f32 %v346_v1, %v150_v21  ;;  %v1328_v61 = vmul.f32 %v2699_v49, %v3129_v24  ;;  %v1751_v41 = vadd.f32 %v1687_v10, %v1555_v0  ;;  %v1391_v46 = vadd.f32 %v1327_v6, %v1194_v26 }
 0x114   :  { %v967_v3 = vadd.f32 %v903_v58, %v771_v53  ;;  %v2062_v42 = vadd.f32 %v5182_v44, %v5357_v59  ;;  %v2222_v20 = vadd.f32 %v5216_v54, %v5357_v59  ;;  %v2057_v22 = vadd.f32 %v5357_v59, %v5218_v36  ;;  %v2086_v40 = vpop.f32.mrf.mxu0 }
 0x115   :  { %v606_v57 = vadd.f32 %v542_v16, %v410_v62  ;;  %3007 = vmatprep.mubr.msk.f32.mxu0 %vm1793_vm1, %v1751_v41  ;;  %v1587_v23 = vadd.f32 %v1523_v35, %v1391_v46  ;;  %v2217_v44 = vadd.f32 %v5357_v59, %v5249_v63  ;;  %v2072_v5 = vadd.f32 %v5251_v14, %v5357_v59 }
 0x116   :  { %v1163_v24 = vadd.f32 %v1099_v56, %v967_v3  ;;  %2377 = vst.msk [vmem:[%s5713_s4 + $0x8] sm:$0xff] %vm2375_vm2, %v2062_v42  ;;  %2409 = vst.msk [vmem:[%s5713_s4 + $0x108] sm:$0xff] %vm2375_vm2, %v2222_v20  ;;  %v2232_v54 = vadd.f32 %v5285_v12, %v5357_v59  ;;  %v2067_v36 = vadd.f32 %v5357_v59, %v5287_v50 }
 0x117   :  { %v803_v15 = vadd.f32 %v739_v19, %v606_v57  ;;  %2376 = vst.msk [vmem:[%s5713_s4] sm:$0xff] %vm2375_vm2, %v2057_v22  ;;  %v2227_v63 = vadd.f32 %v5357_v59, %v5314_v13  ;;  %v3021_v14 = vpop.f32.mrf.mxu1  ;;  %v1783_v10 = vadd.f32 %v1719_v47, %v1587_v23  ;;  %2408 = vst.msk [vmem:[%s5713_s4 + $0x100] sm:$0xff] %vm2375_vm2, %v2217_v44 }
 0x118   :  { %v1360_v6 = vadd.f32 %v1296_v43, %v1163_v24  ;;  %2379 = vst.msk [vmem:[%s5713_s4 + $0x18] sm:$0xff] %vm2375_vm2, %v2072_v5  ;;  %v2082_v12 = vadd.f32 %v5316_v55, %v5357_v59  ;;  %v2242_v50 = vadd.f32 %v3018_v33, %v5357_v59  ;;  %2411 = vst.msk [vmem:[%s5713_s4 + $0x118] sm:$0xff] %vm2375_vm2, %v2232_v54 }
 0x119   :  { %v999_v13 = vadd.f32 %v935_v17, %v803_v15  ;;  %2378 = vst.msk [vmem:[%s5713_s4 + $0x10] sm:$0xff] %vm2375_vm2, %v2067_v36  ;;  %2410 = vst.msk [vmem:[%s5713_s4 + $0x110] sm:$0xff] %vm2375_vm2, %v2227_v63  ;;  %v2077_v55 = vadd.f32 %v5357_v59, %v2076_v45  ;;  %v2237_v28 = vadd.f32 %v5357_v59, %v2236_v9  ;;  %v2246_v35 = vpop.f32.mrf.mxu1  ;;  %3055 = vmatprep.mubr.msk.f32.mxu1 %vm1793_vm1, %v1783_v10 }
 0x11a   :  { %v2092_v8 = vadd.f32 %v2973_v27, %v5357_v59  ;;  %v1556_v47 = vadd.f32 %v1492_v30, %v1360_v6  ;;  %2381 = vst.msk [vmem:[%s5713_s4 + $0x28] sm:$0xff] %vm2375_vm2, %v2082_v12  ;;  %2413 = vst.msk [vmem:[%s5713_s4 + $0x128] sm:$0xff] %vm2375_vm2, %v2242_v50  ;;  %v2252_v4 = vadd.f32 %v3021_v14, %v5357_v59 }
 0x11b   :  { %v2087_v31 = vadd.f32 %v5357_v59, %v2086_v40  ;;  %v2247_v39 = vadd.f32 %v5357_v59, %v2246_v35  ;;  %v1195_v29 = vadd.f32 %v1131_v18, %v999_v13  ;;  %v1524_v48 = vmul.f32 %v2763_v34, %v3131_v25  ;;  %2380 = vst.msk [vmem:[%s5713_s4 + $0x20] sm:$0xff] %vm2375_vm2, %v2077_v55 }
 0x11c   :  { %2412 = vst.msk [vmem:[%s5713_s4 + $0x120] sm:$0xff] %vm2375_vm2, %v2237_v28  ;;  %2383 = vst.msk [vmem:[%s5713_s4 + $0x38] sm:$0xff] %vm2375_vm2, %v2092_v8  ;;  %v1752_v52 = vadd.f32 %v5348_v37, %v1556_v47  ;;  %v1720_v32 = vmul.f32 %v4879_v60, %v2827_v2 }
 0x11d   :  { %2415 = vst.msk [vmem:[%s5713_s4 + $0x138] sm:$0xff] %vm2375_vm2, %v2252_v4  ;;  %2382 = vst.msk [vmem:[%s5713_s4 + $0x30] sm:$0xff] %vm2375_vm2, %v2087_v31  ;;  %v1392_v25 = vadd.f32 %v1328_v61, %v1195_v29 }
 0x11e   :  { %2414 = vst.msk [vmem:[%s5713_s4 + $0x130] sm:$0xff] %vm2375_vm2, %v2247_v39  ;;  %3008 = vmatmul.mubr.msk.f32.gmra.mxu0 %vm1793_vm1, %v1752_v52 }
 0x11f   :  { %v1588_v58 = vadd.f32 %v1524_v48, %v1392_v25 }
 0x121   :  { %v1784_v56 = vadd.f32 %v1720_v32, %v1588_v58 }
 0x123   :  { %3056 = vmatmul.mubr.msk.f32.gmra.mxu1 %vm1793_vm1, %v1784_v56  ;;  %v2976_v43 = vpop.f32.mrf.mxu0 }
 0x124   :  { %v2102_v21 = vadd.f32 %v2976_v43, %v5357_v59 }
 0x125   :  { %v2096_v33 = vpop.f32.mrf.mxu0 }
 0x126   :  { %2385 = vst.msk [vmem:[%s5713_s4 + $0x48] sm:$0xff] %vm2375_vm2, %v2102_v21  ;;  %v2097_v45 = vadd.f32 %v5357_v59, %v2096_v33 }
 0x128   :  { %v3024_v7 = vpop.f32.mrf.mxu1  ;;  %2384 = vst.msk [vmem:[%s5713_s4 + $0x40] sm:$0xff] %vm2375_vm2, %v2097_v45 }
 0x129   :  { %v2262_v60 = vadd.f32 %v3024_v7, %v5357_v59 }
 0x12a   :  { %v2256_v51 = vpop.f32.mrf.mxu1 }
 0x12b   :  { %2417 = vst.msk [vmem:[%s5713_s4 + $0x148] sm:$0xff] %vm2375_vm2, %v2262_v60  ;;  %v2257_v38 = vadd.f32 %v5357_v59, %v2256_v51 }
 0x12d   :  { %2416 = vst.msk [vmem:[%s5713_s4 + $0x140] sm:$0xff] %vm2375_vm2, %v2257_v38 }
 0x134   :  { %v2979_v11 = vpop.f32.mrf.mxu0 }
 0x135   :  { %v2112_v49 = vadd.f32 %v2979_v11, %v5357_v59 }
 0x136   :  { %v2106_v30 = vpop.f32.mrf.mxu0 }
 0x137   :  { %2387 = vst.msk [vmem:[%s5713_s4 + $0x58] sm:$0xff] %vm2375_vm2, %v2112_v49  ;;  %v2107_v37 = vadd.f32 %v5357_v59, %v2106_v30 }
 0x139   :  { %v3027_v1 = vpop.f32.mrf.mxu1  ;;  %2386 = vst.msk [vmem:[%s5713_s4 + $0x50] sm:$0xff] %vm2375_vm2, %v2107_v37 }
 0x13a   :  { %v2272_v16 = vadd.f32 %v3027_v1, %v5357_v59 }
 0x13b   :  { %v2266_v0 = vpop.f32.mrf.mxu1 }
 0x13c   :  { %2419 = vst.msk [vmem:[%s5713_s4 + $0x158] sm:$0xff] %vm2375_vm2, %v2272_v16  ;;  %v2267_v26 = vadd.f32 %v5357_v59, %v2266_v0 }
 0x13e   :  { %2418 = vst.msk [vmem:[%s5713_s4 + $0x150] sm:$0xff] %vm2375_vm2, %v2267_v26 }
 0x145   :  { %v2982_v53 = vpop.f32.mrf.mxu0 }
 0x146   :  { %v2122_v19 = vadd.f32 %v2982_v53, %v5357_v59 }
 0x147   :  { %v2116_v62 = vpop.f32.mrf.mxu0 }
 0x148   :  { %2389 = vst.msk [vmem:[%s5713_s4 + $0x68] sm:$0xff] %vm2375_vm2, %v2122_v19  ;;  %v2117_v17 = vadd.f32 %v5357_v59, %v2116_v62 }
 0x14a   :  { %v3030_v18 = vpop.f32.mrf.mxu1  ;;  %2388 = vst.msk [vmem:[%s5713_s4 + $0x60] sm:$0xff] %vm2375_vm2, %v2117_v17 }
 0x14b   :  { %v2282_v61 = vadd.f32 %v3030_v18, %v5357_v59 }
 0x14c   :  { %v2276_v9 = vpop.f32.mrf.mxu1 }
 0x14d   :  { %2421 = vst.msk [vmem:[%s5713_s4 + $0x168] sm:$0xff] %vm2375_vm2, %v2282_v61  ;;  %v2277_v27 = vadd.f32 %v5357_v59, %v2276_v9 }
 0x14f   :  { %2420 = vst.msk [vmem:[%s5713_s4 + $0x160] sm:$0xff] %vm2375_vm2, %v2277_v27 }
 0x156   :  { %v2985_v41 = vpop.f32.mrf.mxu0 }
 0x157   :  { %v2132_v46 = vadd.f32 %v2985_v41, %v5357_v59 }
 0x158   :  { %v2126_v3 = vpop.f32.mrf.mxu0 }
 0x159   :  { %2391 = vst.msk [vmem:[%s5713_s4 + $0x78] sm:$0xff] %vm2375_vm2, %v2132_v46  ;;  %v2127_v42 = vadd.f32 %v5357_v59, %v2126_v3 }
 0x15b   :  { %v3033_v57 = vpop.f32.mrf.mxu1  ;;  %2390 = vst.msk [vmem:[%s5713_s4 + $0x70] sm:$0xff] %vm2375_vm2, %v2127_v42 }
 0x15c   :  { %v2292_v20 = vadd.f32 %v3033_v57, %v5357_v59 }
 0x15d   :  { %v2286_v22 = vpop.f32.mrf.mxu1 }
 0x15e   :  { %2423 = vst.msk [vmem:[%s5713_s4 + $0x178] sm:$0xff] %vm2375_vm2, %v2292_v20  ;;  %v2287_v23 = vadd.f32 %v5357_v59, %v2286_v22 }
 0x160   :  { %2422 = vst.msk [vmem:[%s5713_s4 + $0x170] sm:$0xff] %vm2375_vm2, %v2287_v23 }
 0x167   :  { %v2988_v24 = vpop.f32.mrf.mxu0 }
 0x168   :  { %v2142_v44 = vadd.f32 %v2988_v24, %v5357_v59 }
 0x169   :  { %v2136_v5 = vpop.f32.mrf.mxu0 }
 0x16a   :  { %2393 = vst.msk [vmem:[%s5713_s4 + $0x88] sm:$0xff] %vm2375_vm2, %v2142_v44  ;;  %v2137_v15 = vadd.f32 %v5357_v59, %v2136_v5 }
 0x16c   :  { %v3036_v54 = vpop.f32.mrf.mxu1  ;;  %2392 = vst.msk [vmem:[%s5713_s4 + $0x80] sm:$0xff] %vm2375_vm2, %v2137_v15 }
 0x16d   :  { %v2302_v36 = vadd.f32 %v3036_v54, %v5357_v59 }
 0x16e   :  { %v2296_v63 = vpop.f32.mrf.mxu1 }
 0x16f   :  { %2425 = vst.msk [vmem:[%s5713_s4 + $0x188] sm:$0xff] %vm2375_vm2, %v2302_v36  ;;  %v2297_v14 = vadd.f32 %v5357_v59, %v2296_v63 }
 0x171   :  { %2424 = vst.msk [vmem:[%s5713_s4 + $0x180] sm:$0xff] %vm2375_vm2, %v2297_v14 }
 0x178   :  { %v2991_v40 = vpop.f32.mrf.mxu0 }
 0x179   :  { %v2152_v10 = vadd.f32 %v2991_v40, %v5357_v59 }
 0x17a   :  { %v2146_v6 = vpop.f32.mrf.mxu0 }
 0x17b   :  { %2395 = vst.msk [vmem:[%s5713_s4 + $0x98] sm:$0xff] %vm2375_vm2, %v2152_v10  ;;  %v2147_v34 = vadd.f32 %v5357_v59, %v2146_v6 }
 0x17d   :  { %v3039_v12 = vpop.f32.mrf.mxu1  ;;  %2394 = vst.msk [vmem:[%s5713_s4 + $0x90] sm:$0xff] %vm2375_vm2, %v2147_v34 }
 0x17e   :  { %v2312_v50 = vadd.f32 %v3039_v12, %v5357_v59 }
 0x17f   :  { %v2306_v13 = vpop.f32.mrf.mxu1 }
 0x180   :  { %2427 = vst.msk [vmem:[%s5713_s4 + $0x198] sm:$0xff] %vm2375_vm2, %v2312_v50  ;;  %v2307_v55 = vadd.f32 %v5357_v59, %v2306_v13 }
 0x182   :  { %2426 = vst.msk [vmem:[%s5713_s4 + $0x190] sm:$0xff] %vm2375_vm2, %v2307_v55 }
 0x189   :  { %v2994_v28 = vpop.f32.mrf.mxu0 }
 0x18a   :  { %v2162_v8 = vadd.f32 %v2994_v28, %v5357_v59 }
 0x18b   :  { %v2156_v35 = vpop.f32.mrf.mxu0 }
 0x18c   :  { %2397 = vst.msk [vmem:[%s5713_s4 + $0xa8] sm:$0xff] %vm2375_vm2, %v2162_v8  ;;  %v2157_v47 = vadd.f32 %v5357_v59, %v2156_v35 }
 0x18e   :  { %v3042_v2 = vpop.f32.mrf.mxu1  ;;  %2396 = vst.msk [vmem:[%s5713_s4 + $0xa0] sm:$0xff] %vm2375_vm2, %v2157_v47 }
 0x18f   :  { %v2322_v4 = vadd.f32 %v3042_v2, %v5357_v59 }
 0x190   :  { %v2316_v31 = vpop.f32.mrf.mxu1 }
 0x191   :  { %2429 = vst.msk [vmem:[%s5713_s4 + $0x1a8] sm:$0xff] %vm2375_vm2, %v2322_v4  ;;  %v2317_v39 = vadd.f32 %v5357_v59, %v2316_v31 }
 0x193   :  { %2428 = vst.msk [vmem:[%s5713_s4 + $0x1a0] sm:$0xff] %vm2375_vm2, %v2317_v39 }
 0x19a   :  { %v2997_v29 = vpop.f32.mrf.mxu0 }
 0x19b   :  { %v2172_v48 = vadd.f32 %v2997_v29, %v5357_v59 }
 0x19c   :  { %v2166_v52 = vpop.f32.mrf.mxu0 }
 0x19d   :  { %2399 = vst.msk [vmem:[%s5713_s4 + $0xb8] sm:$0xff] %vm2375_vm2, %v2172_v48  ;;  %v2167_v25 = vadd.f32 %v5357_v59, %v2166_v52 }
 0x19f   :  { %v3045_v32 = vpop.f32.mrf.mxu1  ;;  %2398 = vst.msk [vmem:[%s5713_s4 + $0xb0] sm:$0xff] %vm2375_vm2, %v2167_v25 }
 0x1a0   :  { %v2332_v58 = vadd.f32 %v3045_v32, %v5357_v59 }
 0x1a1   :  { %v2326_v56 = vpop.f32.mrf.mxu1 }
 0x1a2   :  { %2431 = vst.msk [vmem:[%s5713_s4 + $0x1b8] sm:$0xff] %vm2375_vm2, %v2332_v58  ;;  %v2327_v43 = vadd.f32 %v5357_v59, %v2326_v56 }
 0x1a4   :  { %2430 = vst.msk [vmem:[%s5713_s4 + $0x1b0] sm:$0xff] %vm2375_vm2, %v2327_v43 }
 0x1ab   :  { %v3000_v21 = vpop.f32.mrf.mxu0 }
 0x1ac   :  { %v2182_v33 = vadd.f32 %v3000_v21, %v5357_v59 }
 0x1ad   :  { %v2176_v45 = vpop.f32.mrf.mxu0 }
 0x1ae   :  { %2401 = vst.msk [vmem:[%s5713_s4 + $0xc8] sm:$0xff] %vm2375_vm2, %v2182_v33  ;;  %v2177_v7 = vadd.f32 %v5357_v59, %v2176_v45 }
 0x1b0   :  { %v3048_v60 = vpop.f32.mrf.mxu1  ;;  %2400 = vst.msk [vmem:[%s5713_s4 + $0xc0] sm:$0xff] %vm2375_vm2, %v2177_v7 }
 0x1b1   :  { %v2342_v51 = vadd.f32 %v3048_v60, %v5357_v59 }
 0x1b2   :  { %v2336_v38 = vpop.f32.mrf.mxu1 }
 0x1b3   :  { %2433 = vst.msk [vmem:[%s5713_s4 + $0x1c8] sm:$0xff] %vm2375_vm2, %v2342_v51  ;;  %v2337_v11 = vadd.f32 %v5357_v59, %v2336_v38 }
 0x1b5   :  { %2432 = vst.msk [vmem:[%s5713_s4 + $0x1c0] sm:$0xff] %vm2375_vm2, %v2337_v11 }
 0x1bc   :  { %v3003_v49 = vpop.f32.mrf.mxu0 }
 0x1bd   :  { %v2192_v30 = vadd.f32 %v3003_v49, %v5357_v59 }
 0x1be   :  { %v2186_v37 = vpop.f32.mrf.mxu0 }
 0x1bf   :  { %2403 = vst.msk [vmem:[%s5713_s4 + $0xd8] sm:$0xff] %vm2375_vm2, %v2192_v30  ;;  %v2187_v1 = vadd.f32 %v5357_v59, %v2186_v37 }
 0x1c1   :  { %v3051_v16 = vpop.f32.mrf.mxu1  ;;  %2402 = vst.msk [vmem:[%s5713_s4 + $0xd0] sm:$0xff] %vm2375_vm2, %v2187_v1 }
 0x1c2   :  { %v2352_v0 = vadd.f32 %v3051_v16, %v5357_v59 }
 0x1c3   :  { %v2346_v26 = vpop.f32.mrf.mxu1 }
 0x1c4   :  { %2435 = vst.msk [vmem:[%s5713_s4 + $0x1d8] sm:$0xff] %vm2375_vm2, %v2352_v0  ;;  %v2347_v53 = vadd.f32 %v5357_v59, %v2346_v26 }
 0x1c6   :  { %2434 = vst.msk [vmem:[%s5713_s4 + $0x1d0] sm:$0xff] %vm2375_vm2, %v2347_v53 }
 0x1cd   :  { %v3006_v19 = vpop.f32.mrf.mxu0 }
 0x1ce   :  { %v2202_v62 = vadd.f32 %v3006_v19, %v5357_v59 }
 0x1cf   :  { %v2196_v17 = vpop.f32.mrf.mxu0 }
 0x1d0   :  { %2405 = vst.msk [vmem:[%s5713_s4 + $0xe8] sm:$0xff] %vm2375_vm2, %v2202_v62  ;;  %v2197_v18 = vadd.f32 %v5357_v59, %v2196_v17 }
 0x1d2   :  { %v3054_v61 = vpop.f32.mrf.mxu1  ;;  %2404 = vst.msk [vmem:[%s5713_s4 + $0xe0] sm:$0xff] %vm2375_vm2, %v2197_v18 }
 0x1d3   :  { %v2362_v9 = vadd.f32 %v3054_v61, %v5357_v59 }
 0x1d4   :  { %v2356_v27 = vpop.f32.mrf.mxu1 }
 0x1d5   :  { %2437 = vst.msk [vmem:[%s5713_s4 + $0x1e8] sm:$0xff] %vm2375_vm2, %v2362_v9  ;;  %v2357_v41 = vadd.f32 %v5357_v59, %v2356_v27 }
 0x1d7   :  { %2436 = vst.msk [vmem:[%s5713_s4 + $0x1e0] sm:$0xff] %vm2375_vm2, %v2357_v41 }
 0x1de   :  { %v3009_v46 = vpop.f32.mrf.mxu0 }
 0x1df   :  { %v2212_v3 = vadd.f32 %v3009_v46, %v5357_v59 }
 0x1e0   :  { %v2206_v42 = vpop.f32.mrf.mxu0 }
 0x1e1   :  { %2407 = vst.msk [vmem:[%s5713_s4 + $0xf8] sm:$0xff] %vm2375_vm2, %v2212_v3  ;;  %v2207_v57 = vadd.f32 %v5357_v59, %v2206_v42 }
 0x1e3   :  { %v3057_v20 = vpop.f32.mrf.mxu1  ;;  %2406 = vst.msk [vmem:[%s5713_s4 + $0xf0] sm:$0xff] %vm2375_vm2, %v2207_v57 }
 0x1e4   :  { %v2372_v22 = vadd.f32 %v3057_v20, %v5357_v59 }
 0x1e5   :  { %v2366_v23 = vpop.f32.mrf.mxu1 }
 0x1e6   :  { %2439 = vst.msk [vmem:[%s5713_s4 + $0x1f8] sm:$0xff] %vm2375_vm2, %v2372_v22  ;;  %v2367_v24 = vadd.f32 %v5357_v59, %v2366_v23 }
 0x1e8   :  { %2438 = vst.msk [vmem:[%s5713_s4 + $0x1f0] sm:$0xff] %vm2375_vm2, %v2367_v24 }

</bundles_post_ra>
